<compile_context>
chip_gen: v7x
topology: tpu7x:2x2x1
jax: 0.10.0
libtpu: 0.0.40
codegen_flags: <defaults>
</compile_context>

<pallas_src>
import jax
import jax.numpy as jnp
from jax.experimental import pallas as pl
from jax.experimental.pallas import tpu as pltpu

# ----------------------------- configuration -------------------------------
B_TOTAL = 16       # total bags per pallas_call
TILE_B = 8         # bags per grid step
N = 16             # instances per bag (mil_params k_sample = 16)
FEAT_DIM = 256     # instance feature dim (module default 768; small here)
HIDDEN = 128       # mil_params['hidden_feat'] == target_dim
ATTN_D = 64        # gated-attention inner dim
REPORT_DIM = 1024  # hardcoded in the module
NC = 2             # num_classes
EPS = 1e-5         # nn.LayerNorm default eps

# packed-constants layout: row 0 = biases, row 1 = w_ac, rows 2/3 = fusion wts
CONST_ROWS, CONST_LANES = 8, 1024
_B_FC, _B_ATTN, _B_V, _B_R = 0, 128, 256, 384
_B_F1, _B_F2, _B_HEADS = 512, 768, 896


# ------------------------------- kernel ------------------------------------
def mm_classifier_kernel(img_ref, rep_ref, w_fc, w_attn, w_v, w_r,
                         w_f1, w_f2, w_heads, consts_ref, out_ref):
    f32 = jnp.float32
    bf16 = jnp.bfloat16

    def mm(x, w_ref):
        # bf16 operands, f32 accumulation on the MXU.
        return jnp.dot(x.astype(bf16), w_ref[...], preferred_element_type=f32)

    def normalize(x):
        # LayerNorm mean/var part only (affine folded into downstream weights).
        mu = jnp.mean(x, axis=-1, keepdims=True)
        xc = x - mu
        var = jnp.mean(xc * xc, axis=-1, keepdims=True)
        return xc * jax.lax.rsqrt(var + EPS)

    def cvec(row, col, width):
        return consts_ref[row:row + 1, col:col + width]     # [1, width] f32

    b_fc = cvec(0, _B_FC, HIDDEN)
    b_attn = cvec(0, _B_ATTN, 2 * ATTN_D)
    b_v = cvec(0, _B_V, HIDDEN)
    b_r = cvec(0, _B_R, HIDDEN)
    b_f1 = cvec(0, _B_F1, 256)
    b_f2 = cvec(0, _B_F2, HIDDEN)
    b_heads = cvec(0, _B_HEADS, 3 * NC)
    w_ac_row = cvec(1, 0, ATTN_D)
    w1n = cvec(2, 0, HIDDEN)                                 # w1/(w1+w2), lane-replicated
    w2n = cvec(3, 0, HIDDEN)                                 # w2/(w1+w2), lane-replicated

    # ---- image MIL: gated-attention pooling over all TILE_B*N instances ----
    x = img_ref[...]                                         # [TILE_B*N, FEAT_DIM] bf16
    h = jnp.maximum(mm(x, w_fc) + b_fc, 0.0)                 # [TILE_B*N, H] f32
    proj = mm(h, w_attn) + b_attn                            # [TILE_B*N, 2*ATTN_D]
    a = jnp.tanh(proj[:, :ATTN_D])
    g = jax.nn.sigmoid(proj[:, ATTN_D:])
    ag = a * g

    # attention scores on the VPU (b_ac dropped: cancels in the softmax)
    scores = jnp.sum(ag * w_ac_row, axis=-1, keepdims=True)  # [TILE_B*N, 1]

    # per-bag softmax over the N instances (layout-preserving reshape)
    s3 = scores.reshape(TILE_B, N, 1)
    m = jnp.max(s3, axis=1, keepdims=True)
    e = jnp.exp(s3 - m)
    denom = jnp.sum(e, axis=1, keepdims=True)
    attn = e * pl.reciprocal(denom, approx=True)             # [TILE_B, N, 1]

    h3 = h.reshape(TILE_B, N, HIDDEN)
    feat_vision_raw = jnp.sum(attn * h3, axis=1)             # [TILE_B, H]

    # ---- Poolers (Pooler.forward never applies its Tanh) ----
    feat_vision = mm(normalize(feat_vision_raw), w_v) + b_v  # [TILE_B, H]
    feat_report = mm(normalize(rep_ref[...]), w_r) + b_r     # [TILE_B, H]

    # ---- modality fusion (coefficients pre-normalized at prep time) ----
    global_feat = w1n * feat_vision + w2n * feat_report

    # ---- classifier_final trunk: LN(folded) -> Linear -> Sigmoid -> Linear ----
    z = jax.nn.sigmoid(mm(normalize(global_feat), w_f1) + b_f1)   # [TILE_B, 256]
    z = mm(z, w_f2) + b_f2                                        # [TILE_B, 128]

    # ---- all three 2-wide heads via one block-diagonal matmul, one store ----
    head_in = jnp.concatenate([z, feat_vision, feat_report], axis=1)  # [TILE_B, 3H]
    out_ref[...] = mm(head_in, w_heads) + b_heads                     # [TILE_B, 3*NC]


# ------------------------------- wrapper ------------------------------------
@jax.jit
def mm_classifier_forward(images, reports, params):
    """images: [B_TOTAL, N, FEAT_DIM] f32, reports: [B_TOTAL, REPORT_DIM] f32."""
    images2d = images.reshape(B_TOTAL * N, FEAT_DIM).astype(jnp.bfloat16)
    reports = reports.astype(jnp.float32)

    def const_spec(shape):
        # weights stay VMEM-resident: block index constant across the grid
        return pl.BlockSpec(shape, lambda b: (0, 0))

    out = pl.pallas_call(
        mm_classifier_kernel,
        out_shape=jax.ShapeDtypeStruct((B_TOTAL, 3 * NC), jnp.float32),
        grid=(B_TOTAL // TILE_B,),
        in_specs=[
            pl.BlockSpec((TILE_B * N, FEAT_DIM), lambda b: (b, 0)),   # images (bf16)
            pl.BlockSpec((TILE_B, REPORT_DIM), lambda b: (b, 0)),     # reports (f32)
            const_spec((FEAT_DIM, HIDDEN)),                           # w_fc
            const_spec((HIDDEN, 2 * ATTN_D)),                         # w_attn
            const_spec((HIDDEN, HIDDEN)),                             # w_v
            const_spec((REPORT_DIM, HIDDEN)),                         # w_r
            const_spec((HIDDEN, 256)),                                # w_f1
            const_spec((256, HIDDEN)),                                # w_f2
            const_spec((3 * HIDDEN, 3 * NC)),                         # w_heads (block-diag)
            const_spec((CONST_ROWS, CONST_LANES)),                    # packed consts
        ],
        out_specs=pl.BlockSpec((TILE_B, 3 * NC), lambda b: (b, 0)),
        compiler_params=pltpu.CompilerParams(
            dimension_semantics=("parallel",)),
    )(images2d, reports,
      params["w_fc"], params["w_attn"], params["w_v"], params["w_r"],
      params["w_f1"], params["w_f2"], params["w_heads"], params["consts"])

    logits = out[:, 0:NC]
    results_dict = {
        "logits_vision": out[:, NC:2 * NC],
        "logits_report": out[:, 2 * NC:3 * NC],
    }
    return logits, results_dict


# ----------------------------- parameter init -------------------------------
def init_raw_params(key):
    """Parameters in the original PyTorch-equivalent layout (x @ W + b)."""
    ks = iter(jax.random.split(key, 32))

    def w(shape, scale=0.02):
        return (scale * jax.random.normal(next(ks), shape)).astype(jnp.float32)

    zeros = lambda s: jnp.zeros(s, jnp.float32)
    ones = lambda s: jnp.ones(s, jnp.float32)

    return {
        # MIL gated attention
        "w_fc": w((FEAT_DIM, HIDDEN)), "b_fc": zeros((1, HIDDEN)),
        "w_aa": w((HIDDEN, ATTN_D)), "b_aa": zeros((1, ATTN_D)),
        "w_ab": w((HIDDEN, ATTN_D)), "b_ab": zeros((1, ATTN_D)),
        "w_ac": w((ATTN_D, 1)), "b_ac": zeros((1, 1)),  # b_ac cancels in softmax
        # Pooler vision
        "g_v": ones((1, HIDDEN)), "be_v": zeros((1, HIDDEN)),
        "w_v": w((HIDDEN, HIDDEN)), "b_v": zeros((1, HIDDEN)),
        # Pooler report
        "g_r": ones((1, REPORT_DIM)), "be_r": zeros((1, REPORT_DIM)),
        "w_r": w((REPORT_DIM, HIDDEN)), "b_r": zeros((1, HIDDEN)),
        # classifier_vision / classifier_report
        "w_cv": w((HIDDEN, NC)), "b_cv": zeros((1, NC)),
        "w_cr": w((HIDDEN, NC)), "b_cr": zeros((1, NC)),
        # classifier_final
        "g_f": ones((1, HIDDEN)), "be_f": zeros((1, HIDDEN)),
        "w_f1": w((HIDDEN, 256)), "b_f1": zeros((1, 256)),
        "w_f2": w((256, 128)), "b_f2": zeros((1, 128)),
        "w_f3": w((128, NC)), "b_f3": zeros((1, NC)),
        # fusion scalars
        "w1": jnp.float32(0.5), "w2": jnp.float32(0.5),
    }


def prepare_params(raw):
    """One-time constant folding + bf16 casting (done once, not per call)."""
    f32, bf16 = jnp.float32, jnp.bfloat16

    def fold_ln(gamma, beta, w, b):
        # LNnorm(x)*g + be followed by Linear(W,b) == LNnorm(x) @ (g*W) + (be@W + b)
        return gamma.reshape(-1, 1) * w, beta @ w + b

    w_v, b_v = fold_ln(raw["g_v"], raw["be_v"], raw["w_v"], raw["b_v"])
    w_r, b_r = fold_ln(raw["g_r"], raw["be_r"], raw["w_r"], raw["b_r"])
    w_f1, b_f1 = fold_ln(raw["g_f"], raw["be_f"], raw["w_f1"], raw["b_f1"])

    # fuse the two gated-attention projections that share input h
    w_attn = jnp.concatenate([raw["w_aa"], raw["w_ab"]], axis=1)
    b_attn = jnp.concatenate([raw["b_aa"], raw["b_ab"]], axis=1)

    # block-diagonal fused heads: [z | feat_vision | feat_report] @ W -> all logits
    w_heads = jnp.zeros((3 * HIDDEN, 3 * NC), f32)
    w_heads = w_heads.at[0:HIDDEN, 0:NC].set(raw["w_f3"])
    w_heads = w_heads.at[HIDDEN:2 * HIDDEN, NC:2 * NC].set(raw["w_cv"])
    w_heads = w_heads.at[2 * HIDDEN:3 * HIDDEN, 2 * NC:3 * NC].set(raw["w_cr"])
    b_heads = jnp.concatenate([raw["b_f3"], raw["b_cv"], raw["b_cr"]], axis=1)

    # packed constants: biases, w_ac, pre-normalized fusion coefficients
    w_sum = raw["w1"] + raw["w2"]
    consts = jnp.zeros((CONST_ROWS, CONST_LANES), f32)
    consts = consts.at[0, _B_FC:_B_FC + HIDDEN].set(raw["b_fc"].reshape(-1))
    consts = consts.at[0, _B_ATTN:_B_ATTN + 2 * ATTN_D].set(b_attn.reshape(-1))
    consts = consts.at[0, _B_V:_B_V + HIDDEN].set(b_v.reshape(-1))
    consts = consts.at[0, _B_R:_B_R + HIDDEN].set(b_r.reshape(-1))
    consts = consts.at[0, _B_F1:_B_F1 + 256].set(b_f1.reshape(-1))
    consts = consts.at[0, _B_F2:_B_F2 + HIDDEN].set(raw["b_f2"].reshape(-1))
    consts = consts.at[0, _B_HEADS:_B_HEADS + 3 * NC].set(b_heads.reshape(-1))
    consts = consts.at[1, 0:ATTN_D].set(raw["w_ac"].reshape(-1))
    consts = consts.at[2, 0:HIDDEN].set(jnp.full((HIDDEN,), raw["w1"] / w_sum, f32))
    consts = consts.at[3, 0:HIDDEN].set(jnp.full((HIDDEN,), raw["w2"] / w_sum, f32))

    return {
        "w_fc": raw["w_fc"].astype(bf16),
        "w_attn": w_attn.astype(bf16),
        "w_v": w_v.astype(bf16),
        "w_r": w_r.astype(bf16),
        "w_f1": w_f1.astype(bf16),
        "w_f2": raw["w_f2"].astype(bf16),
        "w_heads": w_heads.astype(bf16),
        "consts": consts,
    }


# --------------------------- pure-JAX reference ------------------------------
def reference_forward(images, reports, params):
    """Same math in plain JAX (f32 versions of the prepared bf16 weights)."""
    f32 = jnp.float32
    p = {k: v.astype(f32) for k, v in params.items()}
    c = p["consts"]
    b_fc = c[0, _B_FC:_B_FC + HIDDEN]
    b_attn = c[0, _B_ATTN:_B_ATTN + 2 * ATTN_D]
    b_v = c[0, _B_V:_B_V + HIDDEN]
    b_r = c[0, _B_R:_B_R + HIDDEN]
    b_f1 = c[0, _B_F1:_B_F1 + 256]
    b_f2 = c[0, _B_F2:_B_F2 + HIDDEN]
    b_hd = c[0, _B_HEADS:_B_HEADS + 3 * NC]
    w_ac = c[1, 0:ATTN_D]
    w1n, w2n = c[2, 0], c[3, 0]

    def norm(x):
        mu = x.mean(-1, keepdims=True)
        xc = x - mu
        return xc / jnp.sqrt((xc * xc).mean(-1, keepdims=True) + EPS)

    x = images.reshape(B_TOTAL * N, FEAT_DIM).astype(jnp.bfloat16).astype(f32)
    h = jnp.maximum(x @ p["w_fc"] + b_fc, 0.0)
    proj = h @ p["w_attn"] + b_attn
    ag = jnp.tanh(proj[:, :ATTN_D]) * jax.nn.sigmoid(proj[:, ATTN_D:])
    scores = (ag * w_ac).sum(-1).reshape(B_TOTAL, N)
    attn = jax.nn.softmax(scores, axis=-1)
    fv_raw = jnp.einsum("bn,bnh->bh", attn, h.reshape(B_TOTAL, N, HIDDEN))
    fv = norm(fv_raw) @ p["w_v"] + b_v
    fr = norm(reports.astype(f32)) @ p["w_r"] + b_r
    gf = w1n * fv + w2n * fr
    z = jax.nn.sigmoid(norm(gf) @ p["w_f1"] + b_f1)
    z = z @ p["w_f2"] + b_f2
    head_in = jnp.concatenate([z, fv, fr], axis=1)
    out = head_in @ p["w_heads"] + b_hd
    return out[:, 0:NC], out[:, NC:2 * NC], out[:, 2 * NC:3 * NC]


# --------------------------------- main --------------------------------------
if __name__ == "__main__":
    key = jax.random.PRNGKey(0)
    k_img, k_rep, k_par = jax.random.split(key, 3)

    images = jax.random.normal(k_img, (B_TOTAL, N, FEAT_DIM), dtype=jnp.float32)
    reports = jax.random.normal(k_rep, (B_TOTAL, REPORT_DIM), dtype=jnp.float32)
    params = prepare_params(init_raw_params(k_par))

    logits, results = mm_classifier_forward(images, reports, params)
    jax.block_until_ready((logits, results))

    assert logits.shape == (B_TOTAL, NC)
    assert results["logits_vision"].shape == (B_TOTAL, NC)
    assert results["logits_report"].shape == (B_TOTAL, NC)

    ref_l, ref_v, ref_r = reference_forward(images, reports, params)
    max_err = max(
        float(jnp.max(jnp.abs(logits - ref_l))),
        float(jnp.max(jnp.abs(results["logits_vision"] - ref_v))),
        float(jnp.max(jnp.abs(results["logits_report"] - ref_r))),
    )
    assert max_err < 5e-2, f"max abs err vs reference: {max_err}"
    print("KERNEL_OK")
</pallas_src>

<mosaic_0001>
module attributes {stable_mosaic.version = 11 : i64} {
  func.func @mm_classifier_kernel(%arg0: i32, %arg1: memref<128x256xbf16, #tpu.memory_space<vmem>>, %arg2: memref<8x1024xf32, #tpu.memory_space<vmem>>, %arg3: memref<256x128xbf16, #tpu.memory_space<vmem>>, %arg4: memref<128x128xbf16, #tpu.memory_space<vmem>>, %arg5: memref<128x128xbf16, #tpu.memory_space<vmem>>, %arg6: memref<1024x128xbf16, #tpu.memory_space<vmem>>, %arg7: memref<128x256xbf16, #tpu.memory_space<vmem>>, %arg8: memref<256x128xbf16, #tpu.memory_space<vmem>>, %arg9: memref<384x6xbf16, #tpu.memory_space<vmem>>, %arg10: memref<8x1024xf32, #tpu.memory_space<vmem>>, %arg11: memref<8x6xf32, #tpu.memory_space<vmem>>) attributes {dimension_semantics = [#tpu.dimension_semantics<parallel>], iteration_bounds = array<i64: 2>, scalar_prefetch = 0 : i64, scratch_operands = 0 : i64, tpu.core_type = #tpu.core_type<tc>, window_params = [{transform_indices = @transform_0, window_bounds = array<i64: 128, 256>}, {transform_indices = @transform_1, window_bounds = array<i64: 8, 1024>}, {pipeline_mode = #tpu.pipeline_mode<synchronous>, transform_indices = @transform_2, window_bounds = array<i64: 256, 128>}, {pipeline_mode = #tpu.pipeline_mode<synchronous>, transform_indices = @transform_3, window_bounds = array<i64: 128, 128>}, {pipeline_mode = #tpu.pipeline_mode<synchronous>, transform_indices = @transform_4, window_bounds = array<i64: 128, 128>}, {pipeline_mode = #tpu.pipeline_mode<synchronous>, transform_indices = @transform_5, window_bounds = array<i64: 1024, 128>}, {pipeline_mode = #tpu.pipeline_mode<synchronous>, transform_indices = @transform_6, window_bounds = array<i64: 128, 256>}, {pipeline_mode = #tpu.pipeline_mode<synchronous>, transform_indices = @transform_7, window_bounds = array<i64: 256, 128>}, {pipeline_mode = #tpu.pipeline_mode<synchronous>, transform_indices = @transform_8, window_bounds = array<i64: 384, 6>}, {pipeline_mode = #tpu.pipeline_mode<synchronous>, transform_indices = @transform_9, window_bounds = array<i64: 8, 1024>}, {transform_indices = @transform_10, window_bounds = array<i64: 8, 6>}]} {
    %c0 = arith.constant 0 : index
    %c0_0 = arith.constant 0 : index
    %0 = vector.load %arg10[%c0, %c0_0] : memref<8x1024xf32, #tpu.memory_space<vmem>>, vector<1x128xf32>
    %c0_1 = arith.constant 0 : index
    %c128 = arith.constant 128 : index
    %1 = vector.load %arg10[%c0_1, %c128] : memref<8x1024xf32, #tpu.memory_space<vmem>>, vector<1x128xf32>
    %c0_2 = arith.constant 0 : index
    %c256 = arith.constant 256 : index
    %2 = vector.load %arg10[%c0_2, %c256] : memref<8x1024xf32, #tpu.memory_space<vmem>>, vector<1x128xf32>
    %c0_3 = arith.constant 0 : index
    %c384 = arith.constant 384 : index
    %3 = vector.load %arg10[%c0_3, %c384] : memref<8x1024xf32, #tpu.memory_space<vmem>>, vector<1x128xf32>
    %c0_4 = arith.constant 0 : index
    %c512 = arith.constant 512 : index
    %4 = vector.load %arg10[%c0_4, %c512] : memref<8x1024xf32, #tpu.memory_space<vmem>>, vector<1x256xf32>
    %c0_5 = arith.constant 0 : index
    %c768 = arith.constant 768 : index
    %5 = vector.load %arg10[%c0_5, %c768] : memref<8x1024xf32, #tpu.memory_space<vmem>>, vector<1x128xf32>
    %c0_6 = arith.constant 0 : index
    %c896 = arith.constant 896 : index
    %6 = vector.load %arg10[%c0_6, %c896] : memref<8x1024xf32, #tpu.memory_space<vmem>>, vector<1x6xf32>
    %c1 = arith.constant 1 : index
    %c0_7 = arith.constant 0 : index
    %7 = vector.load %arg10[%c1, %c0_7] : memref<8x1024xf32, #tpu.memory_space<vmem>>, vector<1x64xf32>
    %c2 = arith.constant 2 : index
    %c0_8 = arith.constant 0 : index
    %8 = vector.load %arg10[%c2, %c0_8] : memref<8x1024xf32, #tpu.memory_space<vmem>>, vector<1x128xf32>
    %c3 = arith.constant 3 : index
    %c0_9 = arith.constant 0 : index
    %9 = vector.load %arg10[%c3, %c0_9] : memref<8x1024xf32, #tpu.memory_space<vmem>>, vector<1x128xf32>
    %c0_10 = arith.constant 0 : index
    %c0_11 = arith.constant 0 : index
    %10 = vector.load %arg1[%c0_10, %c0_11] : memref<128x256xbf16, #tpu.memory_space<vmem>>, vector<128x256xbf16>
    %c0_12 = arith.constant 0 : index
    %c0_13 = arith.constant 0 : index
    %11 = vector.load %arg3[%c0_12, %c0_13] : memref<256x128xbf16, #tpu.memory_space<vmem>>, vector<256x128xbf16>
    %cst = arith.constant dense<0.000000e+00> : vector<128x128xf32>
    %12 = tpu.matmul %10, %11, %cst {dimension_numbers = #tpu.dot_dimension_numbers<[1], [0], [0], [1], [0, 0, 1, 1], [], []>} : vector<128x256xbf16>, vector<256x128xbf16>, vector<128x128xf32> -> vector<128x128xf32>
    %13 = vector.broadcast %0 : vector<1x128xf32> to vector<128x128xf32>
    %14 = arith.addf %12, %13 : vector<128x128xf32>
    %cst_14 = arith.constant 0.000000e+00 : f32
    %15 = vector.broadcast %cst_14 : f32 to vector<128x128xf32>
    %16 = arith.maximumf %14, %15 : vector<128x128xf32>
    %17 = arith.truncf %16 : vector<128x128xf32> to vector<128x128xbf16>
    %c0_15 = arith.constant 0 : index
    %c0_16 = arith.constant 0 : index
    %18 = vector.load %arg4[%c0_15, %c0_16] : memref<128x128xbf16, #tpu.memory_space<vmem>>, vector<128x128xbf16>
    %cst_17 = arith.constant dense<0.000000e+00> : vector<128x128xf32>
    %19 = tpu.matmul %17, %18, %cst_17 {dimension_numbers = #tpu.dot_dimension_numbers<[1], [0], [0], [1], [0, 0, 1, 1], [], []>} : vector<128x128xbf16>, vector<128x128xbf16>, vector<128x128xf32> -> vector<128x128xf32>
    %20 = vector.broadcast %1 : vector<1x128xf32> to vector<128x128xf32>
    %21 = arith.addf %19, %20 : vector<128x128xf32>
    %22 = vector.extract_strided_slice %21 {offsets = [0, 0], sizes = [128, 64], strides = [1, 1]} : vector<128x128xf32> to vector<128x64xf32>
    %23 = math.tanh %22 : vector<128x64xf32>
    %24 = vector.extract_strided_slice %21 {offsets = [0, 64], sizes = [128, 64], strides = [1, 1]} : vector<128x128xf32> to vector<128x64xf32>
    %25 = arith.negf %24 : vector<128x64xf32>
    %26 = math.exp %25 : vector<128x64xf32>
    %cst_18 = arith.constant 1.000000e+00 : f32
    %27 = vector.broadcast %cst_18 : f32 to vector<128x64xf32>
    %28 = arith.addf %27, %26 : vector<128x64xf32>
    %29 = arith.divf %27, %28 : vector<128x64xf32>
    %30 = arith.mulf %23, %29 : vector<128x64xf32>
    %31 = vector.broadcast %7 : vector<1x64xf32> to vector<128x64xf32>
    %32 = arith.mulf %30, %31 : vector<128x64xf32>
    %cst_19 = arith.constant dense<0.000000e+00> : vector<128xf32>
    %33 = vector.multi_reduction <add>, %32, %cst_19 [1] : vector<128x64xf32> to vector<128xf32>
    %34 = vector.shape_cast %33 : vector<128xf32> to vector<128x1xf32>
    %35 = vector.shape_cast %34 : vector<128x1xf32> to vector<8x16x1xf32>
    %cst_20 = arith.constant dense<0xFF800000> : vector<8x1xf32>
    %36 = vector.multi_reduction <maximumf>, %35, %cst_20 [1] : vector<8x16x1xf32> to vector<8x1xf32>
    %37 = vector.shape_cast %36 : vector<8x1xf32> to vector<8x1x1xf32>
    %38 = vector.broadcast %37 : vector<8x1x1xf32> to vector<8x16x1xf32>
    %39 = arith.subf %35, %38 : vector<8x16x1xf32>
    %40 = math.exp %39 : vector<8x16x1xf32>
    %cst_21 = arith.constant dense<0.000000e+00> : vector<8x1xf32>
    %41 = vector.multi_reduction <add>, %40, %cst_21 [1] : vector<8x16x1xf32> to vector<8x1xf32>
    %42 = vector.shape_cast %41 : vector<8x1xf32> to vector<8x1x1xf32>
    %43 = tpu.reciprocal %42 {approx = true} : vector<8x1x1xf32> -> vector<8x1x1xf32>
    %44 = vector.broadcast %43 : vector<8x1x1xf32> to vector<8x16x1xf32>
    %45 = arith.mulf %40, %44 : vector<8x16x1xf32>
    %46 = vector.shape_cast %16 : vector<128x128xf32> to vector<8x16x128xf32>
    %47 = vector.broadcast %45 : vector<8x16x1xf32> to vector<8x16x128xf32>
    %48 = arith.mulf %47, %46 : vector<8x16x128xf32>
    %cst_22 = arith.constant dense<0.000000e+00> : vector<8x128xf32>
    %49 = vector.multi_reduction <add>, %48, %cst_22 [1] : vector<8x16x128xf32> to vector<8x128xf32>
    %cst_23 = arith.constant dense<0.000000e+00> : vector<8xf32>
    %50 = vector.multi_reduction <add>, %49, %cst_23 [1] : vector<8x128xf32> to vector<8xf32>
    %51 = vector.shape_cast %50 : vector<8xf32> to vector<8x1xf32>
    %cst_24 = arith.constant 1.280000e+02 : f32
    %52 = vector.broadcast %cst_24 : f32 to vector<8x1xf32>
    %53 = arith.divf %51, %52 : vector<8x1xf32>
    %54 = vector.broadcast %53 : vector<8x1xf32> to vector<8x128xf32>
    %55 = arith.subf %49, %54 : vector<8x128xf32>
    %56 = arith.mulf %55, %55 : vector<8x128xf32>
    %cst_25 = arith.constant dense<0.000000e+00> : vector<8xf32>
    %57 = vector.multi_reduction <add>, %56, %cst_25 [1] : vector<8x128xf32> to vector<8xf32>
    %58 = vector.shape_cast %57 : vector<8xf32> to vector<8x1xf32>
    %cst_26 = arith.constant 1.280000e+02 : f32
    %59 = vector.broadcast %cst_26 : f32 to vector<8x1xf32>
    %60 = arith.divf %58, %59 : vector<8x1xf32>
    %cst_27 = arith.constant 9.99999974E-6 : f32
    %61 = vector.broadcast %cst_27 : f32 to vector<8x1xf32>
    %62 = arith.addf %60, %61 : vector<8x1xf32>
    %63 = math.rsqrt %62 : vector<8x1xf32>
    %64 = vector.broadcast %63 : vector<8x1xf32> to vector<8x128xf32>
    %65 = arith.mulf %55, %64 : vector<8x128xf32>
    %66 = arith.truncf %65 : vector<8x128xf32> to vector<8x128xbf16>
    %c0_28 = arith.constant 0 : index
    %c0_29 = arith.constant 0 : index
    %67 = vector.load %arg5[%c0_28, %c0_29] : memref<128x128xbf16, #tpu.memory_space<vmem>>, vector<128x128xbf16>
    %cst_30 = arith.constant dense<0.000000e+00> : vector<8x128xf32>
    %68 = tpu.matmul %66, %67, %cst_30 {dimension_numbers = #tpu.dot_dimension_numbers<[1], [0], [0], [1], [0, 0, 1, 1], [], []>} : vector<8x128xbf16>, vector<128x128xbf16>, vector<8x128xf32> -> vector<8x128xf32>
    %69 = vector.broadcast %2 : vector<1x128xf32> to vector<8x128xf32>
    %70 = arith.addf %68, %69 : vector<8x128xf32>
    %c0_31 = arith.constant 0 : index
    %c0_32 = arith.constant 0 : index
    %71 = vector.load %arg2[%c0_31, %c0_32] : memref<8x1024xf32, #tpu.memory_space<vmem>>, vector<8x1024xf32>
    %cst_33 = arith.constant dense<0.000000e+00> : vector<8xf32>
    %72 = vector.multi_reduction <add>, %71, %cst_33 [1] : vector<8x1024xf32> to vector<8xf32>
    %73 = vector.shape_cast %72 : vector<8xf32> to vector<8x1xf32>
    %cst_34 = arith.constant 1.024000e+03 : f32
    %74 = vector.broadcast %cst_34 : f32 to vector<8x1xf32>
    %75 = arith.divf %73, %74 : vector<8x1xf32>
    %76 = vector.broadcast %75 : vector<8x1xf32> to vector<8x1024xf32>
    %77 = arith.subf %71, %76 : vector<8x1024xf32>
    %78 = arith.mulf %77, %77 : vector<8x1024xf32>
    %cst_35 = arith.constant dense<0.000000e+00> : vector<8xf32>
    %79 = vector.multi_reduction <add>, %78, %cst_35 [1] : vector<8x1024xf32> to vector<8xf32>
    %80 = vector.shape_cast %79 : vector<8xf32> to vector<8x1xf32>
    %cst_36 = arith.constant 1.024000e+03 : f32
    %81 = vector.broadcast %cst_36 : f32 to vector<8x1xf32>
    %82 = arith.divf %80, %81 : vector<8x1xf32>
    %cst_37 = arith.constant 9.99999974E-6 : f32
    %83 = vector.broadcast %cst_37 : f32 to vector<8x1xf32>
    %84 = arith.addf %82, %83 : vector<8x1xf32>
    %85 = math.rsqrt %84 : vector<8x1xf32>
    %86 = vector.broadcast %85 : vector<8x1xf32> to vector<8x1024xf32>
    %87 = arith.mulf %77, %86 : vector<8x1024xf32>
    %88 = arith.truncf %87 : vector<8x1024xf32> to vector<8x1024xbf16>
    %c0_38 = arith.constant 0 : index
    %c0_39 = arith.constant 0 : index
    %89 = vector.load %arg6[%c0_38, %c0_39] : memref<1024x128xbf16, #tpu.memory_space<vmem>>, vector<1024x128xbf16>
    %cst_40 = arith.constant dense<0.000000e+00> : vector<8x128xf32>
    %90 = tpu.matmul %88, %89, %cst_40 {dimension_numbers = #tpu.dot_dimension_numbers<[1], [0], [0], [1], [0, 0, 1, 1], [], []>} : vector<8x1024xbf16>, vector<1024x128xbf16>, vector<8x128xf32> -> vector<8x128xf32>
    %91 = vector.broadcast %3 : vector<1x128xf32> to vector<8x128xf32>
    %92 = arith.addf %90, %91 : vector<8x128xf32>
    %93 = vector.broadcast %8 : vector<1x128xf32> to vector<8x128xf32>
    %94 = arith.mulf %93, %70 : vector<8x128xf32>
    %95 = vector.broadcast %9 : vector<1x128xf32> to vector<8x128xf32>
    %96 = arith.mulf %95, %92 : vector<8x128xf32>
    %97 = arith.addf %94, %96 : vector<8x128xf32>
    %cst_41 = arith.constant dense<0.000000e+00> : vector<8xf32>
    %98 = vector.multi_reduction <add>, %97, %cst_41 [1] : vector<8x128xf32> to vector<8xf32>
    %99 = vector.shape_cast %98 : vector<8xf32> to vector<8x1xf32>
    %cst_42 = arith.constant 1.280000e+02 : f32
    %100 = vector.broadcast %cst_42 : f32 to vector<8x1xf32>
    %101 = arith.divf %99, %100 : vector<8x1xf32>
    %102 = vector.broadcast %101 : vector<8x1xf32> to vector<8x128xf32>
    %103 = arith.subf %97, %102 : vector<8x128xf32>
    %104 = arith.mulf %103, %103 : vector<8x128xf32>
    %cst_43 = arith.constant dense<0.000000e+00> : vector<8xf32>
    %105 = vector.multi_reduction <add>, %104, %cst_43 [1] : vector<8x128xf32> to vector<8xf32>
    %106 = vector.shape_cast %105 : vector<8xf32> to vector<8x1xf32>
    %cst_44 = arith.constant 1.280000e+02 : f32
    %107 = vector.broadcast %cst_44 : f32 to vector<8x1xf32>
    %108 = arith.divf %106, %107 : vector<8x1xf32>
    %cst_45 = arith.constant 9.99999974E-6 : f32
    %109 = vector.broadcast %cst_45 : f32 to vector<8x1xf32>
    %110 = arith.addf %108, %109 : vector<8x1xf32>
    %111 = math.rsqrt %110 : vector<8x1xf32>
    %112 = vector.broadcast %111 : vector<8x1xf32> to vector<8x128xf32>
    %113 = arith.mulf %103, %112 : vector<8x128xf32>
    %114 = arith.truncf %113 : vector<8x128xf32> to vector<8x128xbf16>
    %c0_46 = arith.constant 0 : index
    %c0_47 = arith.constant 0 : index
    %115 = vector.load %arg7[%c0_46, %c0_47] : memref<128x256xbf16, #tpu.memory_space<vmem>>, vector<128x256xbf16>
    %cst_48 = arith.constant dense<0.000000e+00> : vector<8x256xf32>
    %116 = tpu.matmul %114, %115, %cst_48 {dimension_numbers = #tpu.dot_dimension_numbers<[1], [0], [0], [1], [0, 0, 1, 1], [], []>} : vector<8x128xbf16>, vector<128x256xbf16>, vector<8x256xf32> -> vector<8x256xf32>
    %117 = vector.broadcast %4 : vector<1x256xf32> to vector<8x256xf32>
    %118 = arith.addf %116, %117 : vector<8x256xf32>
    %119 = arith.negf %118 : vector<8x256xf32>
    %120 = math.exp %119 : vector<8x256xf32>
    %cst_49 = arith.constant 1.000000e+00 : f32
    %121 = vector.broadcast %cst_49 : f32 to vector<8x256xf32>
    %122 = arith.addf %121, %120 : vector<8x256xf32>
    %123 = arith.divf %121, %122 : vector<8x256xf32>
    %124 = arith.truncf %123 : vector<8x256xf32> to vector<8x256xbf16>
    %c0_50 = arith.constant 0 : index
    %c0_51 = arith.constant 0 : index
    %125 = vector.load %arg8[%c0_50, %c0_51] : memref<256x128xbf16, #tpu.memory_space<vmem>>, vector<256x128xbf16>
    %cst_52 = arith.constant dense<0.000000e+00> : vector<8x128xf32>
    %126 = tpu.matmul %124, %125, %cst_52 {dimension_numbers = #tpu.dot_dimension_numbers<[1], [0], [0], [1], [0, 0, 1, 1], [], []>} : vector<8x256xbf16>, vector<256x128xbf16>, vector<8x128xf32> -> vector<8x128xf32>
    %127 = vector.broadcast %5 : vector<1x128xf32> to vector<8x128xf32>
    %128 = arith.addf %126, %127 : vector<8x128xf32>
    %129 = tpu.concatenate %128, %70, %92 in 1 : vector<8x128xf32>, vector<8x128xf32>, vector<8x128xf32> -> vector<8x384xf32>
    %130 = arith.truncf %129 : vector<8x384xf32> to vector<8x384xbf16>
    %c0_53 = arith.constant 0 : index
    %c0_54 = arith.constant 0 : index
    %131 = vector.load %arg9[%c0_53, %c0_54] : memref<384x6xbf16, #tpu.memory_space<vmem>>, vector<384x6xbf16>
    %cst_55 = arith.constant dense<0.000000e+00> : vector<8x6xf32>
    %132 = tpu.matmul %130, %131, %cst_55 {dimension_numbers = #tpu.dot_dimension_numbers<[1], [0], [0], [1], [0, 0, 1, 1], [], []>} : vector<8x384xbf16>, vector<384x6xbf16>, vector<8x6xf32> -> vector<8x6xf32>
    %133 = vector.broadcast %6 : vector<1x6xf32> to vector<8x6xf32>
    %134 = arith.addf %132, %133 : vector<8x6xf32>
    %c0_56 = arith.constant 0 : index
    %c0_57 = arith.constant 0 : index
    %135 = vector.load %arg11[%c0_56, %c0_57] : memref<8x6xf32, #tpu.memory_space<vmem>>, vector<8x6xf32>
    tpu.vector_store %arg11[%c0_56, %c0_57], %134 {strides = array<i32>} : memref<8x6xf32, #tpu.memory_space<vmem>>, vector<8x6xf32>,
    return
  }
  func.func @transform_0(%arg0: i32) -> (i32, i32) {
    %c0_i32 = arith.constant 0 : i32
    %c0_i32_0 = arith.constant 0 : i32
    return %arg0, %c0_i32 : i32, i32
  }
  func.func @transform_1(%arg0: i32) -> (i32, i32) {
    %c0_i32 = arith.constant 0 : i32
    %c0_i32_0 = arith.constant 0 : i32
    return %arg0, %c0_i32 : i32, i32
  }
  func.func @transform_2(%arg0: i32) -> (i32, i32) {
    %c0_i32 = arith.constant 0 : i32
    %c0_i32_0 = arith.constant 0 : i32
    %c0_i32_1 = arith.constant 0 : i32
    return %c0_i32, %c0_i32_0 : i32, i32
  }
  func.func @transform_3(%arg0: i32) -> (i32, i32) {
    %c0_i32 = arith.constant 0 : i32
    %c0_i32_0 = arith.constant 0 : i32
    %c0_i32_1 = arith.constant 0 : i32
    return %c0_i32, %c0_i32_0 : i32, i32
  }
  func.func @transform_4(%arg0: i32) -> (i32, i32) {
    %c0_i32 = arith.constant 0 : i32
    %c0_i32_0 = arith.constant 0 : i32
    %c0_i32_1 = arith.constant 0 : i32
    return %c0_i32, %c0_i32_0 : i32, i32
  }
  func.func @transform_5(%arg0: i32) -> (i32, i32) {
    %c0_i32 = arith.constant 0 : i32
    %c0_i32_0 = arith.constant 0 : i32
    %c0_i32_1 = arith.constant 0 : i32
    return %c0_i32, %c0_i32_0 : i32, i32
  }
  func.func @transform_6(%arg0: i32) -> (i32, i32) {
    %c0_i32 = arith.constant 0 : i32
    %c0_i32_0 = arith.constant 0 : i32
    %c0_i32_1 = arith.constant 0 : i32
    return %c0_i32, %c0_i32_0 : i32, i32
  }
  func.func @transform_7(%arg0: i32) -> (i32, i32) {
    %c0_i32 = arith.constant 0 : i32
    %c0_i32_0 = arith.constant 0 : i32
    %c0_i32_1 = arith.constant 0 : i32
    return %c0_i32, %c0_i32_0 : i32, i32
  }
  func.func @transform_8(%arg0: i32) -> (i32, i32) {
    %c0_i32 = arith.constant 0 : i32
    %c0_i32_0 = arith.constant 0 : i32
    %c0_i32_1 = arith.constant 0 : i32
    return %c0_i32, %c0_i32_0 : i32, i32
  }
  func.func @transform_9(%arg0: i32) -> (i32, i32) {
    %c0_i32 = arith.constant 0 : i32
    %c0_i32_0 = arith.constant 0 : i32
    %c0_i32_1 = arith.constant 0 : i32
    return %c0_i32, %c0_i32_0 : i32, i32
  }
  func.func @transform_10(%arg0: i32) -> (i32, i32) {
    %c0_i32 = arith.constant 0 : i32
    %c0_i32_0 = arith.constant 0 : i32
    return %arg0, %c0_i32 : i32, i32
  }
}

</mosaic_0001>

<bundles_post_ra>
// kernel: mm_classifier_forward.1
= control target key start
LH: loop header
LB: loop body
LE: loop exit
PB: predicated region body
PF: predicated region fallthrough
CT: control target
= control target key end

     0   :  { %15 = vsyncpa [#allocation3], 0  ;;  %s5299_s0 = inlined_call_operand.vmem [shape: bf16[256,256], index: 0, kind: input, shape index: {}]   ;;  %s5300_s1 = inlined_call_operand.vmem [shape: f32[16,1024], index: 1, kind: input, shape index: {}]   ;;  %s5301_s2 = inlined_call_operand.vmem [shape: bf16[256,128], index: 2, kind: input, shape index: {}]   ;;  %s5302_s3 = inlined_call_operand.vmem [shape: bf16[128,128], index: 3, kind: input, shape index: {}]   ;;  %s5303_s4 = inlined_call_operand.hbm [shape: bf16[128,128], index: 4, kind: input, shape index: {}]   ;;  %s5304_s5 = inlined_call_operand.vmem [shape: bf16[1024,128], index: 5, kind: input, shape index: {}]   ;;  %s5305_s6 = inlined_call_operand.vmem [shape: bf16[128,256], index: 6, kind: input, shape index: {}]   ;;  %s5306_s7 = inlined_call_operand.hbm [shape: bf16[256,128], index: 7, kind: input, shape index: {}]   ;;  %s5307_s8 = inlined_call_operand.vmem [shape: bf16[384,6], index: 8, kind: input, shape index: {}]   ;;  %s5308_s9 = inlined_call_operand.hbm [shape: f32[8,1024], index: 9, kind: input, shape index: {}]   ;;  %s5309_s10 = inlined_call_operand.vmem [shape: f32[16,6], index: 10, kind: output, shape index: {}]  }
   0x1   :  { %16 = vsyncpa [#allocation5], 0  ;;  %s4224_s13 = smov 0  }
   0x2 LB: > { %s4230_s14 = sadd.s32 4294967295, %s4158_s13   ;;  %p3166_p0 = scmp.ge.s32.totalorder %s4158_s13, 1  ;;  %s4158_s13 = sphi %s4224_s13, %s22_s13  }
   0x3   : > { %p273_p1 = scmp.lt.s32.totalorder %s4158_s13, 3  ;;  %p5310_p2 = scmp.eq.s32.totalorder %s4230_s14, 0 }
   0x4   : > { %s4160_s16 = smov [#allocation4]   ;;  %s4161_s18 = smov [#allocation2]  }
   0x5   : > { %p4235_p3 = pnand %p3166_p0, %p273_p1  ;;  %s310_s17 = sshll.u32 %s4160_s16, 4  ;;  %s311_s17 = int_to_ptr.vmem [resolvable:$true] %s310_s17 }
   0x6   : > { %s291_s19 = sshll.u32 %s4161_s18, 4  ;;  %s4162_s21 = smov [#allocation6]   ;;  %s4247_s19 = int_to_ptr.vmem [resolvable:$true] %s291_s19 }
   0x7   : > { %s5328_s15 = scalar_select %p4235_p3, 1, 0 }
   0x8   : > { %p3685_p4 = pneg %p4235_p3  ;;  %s327_s22 = sshll.u32 %s4162_s21, 4  ;;  %s4249_s22 = int_to_ptr.vmem [resolvable:$true] %s327_s22 }
   0x9   : > { %s4060_s25 = scalar_lea.hbm %s5306_s7, 2048 }
   0xa   : > { %p4243_p5 = pnand %p5310_p2, %p3685_p4  ;;  %p4061_p6 = scmp.ne.s32.totalorder %s5306_s7, %s4060_s25 }
   0xb   : > { %p4067_p10 = scmp.lt.u32.totalorder %s4060_s25, %s5306_s7 }
   0xc   : > { %p4259_p7 = pneg %p4243_p5 }
   0xe   : > { %p4063_p8 = pnand %p4259_p7, %p4061_p6 }
  0x10   : > { %p4064_p9 = pneg %p4063_p8 }
  0x12   : > { %p4069_p11 = pnand %p4067_p10, %p4064_p9 }
  0x14   : > { %4072 = shalt.err (!%p4069_p11)
}
  0x15   : > { %s4073_s11 = scalar_lea.vmem %s311_s17, 2048  ;;  %p4081_p1 = scmp.lt.s32.totalorder %s311_s17, %s311_s17 }
  0x16   : > { %p4074_p12 = scmp.ne.s32.totalorder %s311_s17, %s4073_s11  ;;  %p4082_p4 = scmp.lt.s32.totalorder %s4073_s11, %s4073_s11 }
  0x18   : > { %p4076_p13 = pnand %p4074_p12, %p4259_p7  ;;  %p4083_p2 = por %p4082_p4, %p4081_p1 }
  0x1a   : > { %p4077_p0 = pneg %p4076_p13 }
  0x1c   : > { %p4084_p3 = pnand %p4083_p2, %p4077_p0 }
  0x1e   : > { %4087 = shalt.err (!%p4084_p3)
}
  0x1f   : > { %s4163_s12 = smov 64   ;;  %s4164_s16 = smov 4  }
  0x20   : > { %3691 = dma.hbm_to_vmem [thread:$0]  (!%p4243_p5), %s5306_s7, 2048, %s311_s17, [#allocation5], %s4163_s12, %s4163_s12, %s4164_s16  }
  0x21   : > { %s4088_s25 = scalar_lea.hbm %s5303_s4, 1024 }
  0x22   : > { %p4089_p6 = scmp.ne.s32.totalorder %s5303_s4, %s4088_s25  ;;  %p4095_p8 = scmp.lt.u32.totalorder %s4088_s25, %s5303_s4 }
  0x24   : > { %p4091_p2 = pnand %p4089_p6, %p4259_p7 }
  0x26   : > { %p4092_p3 = pneg %p4091_p2 }
  0x28   : > { %p4097_p9 = pnand %p4095_p8, %p4092_p3 }
  0x2a   : > { %4100 = shalt.err (!%p4097_p9)
}
  0x2b   : > { %s4101_s17 = scalar_lea.vmem %s4247_s19, 1024  ;;  %p4109_p13 = scmp.lt.s32.totalorder %s4247_s19, %s4247_s19 }
  0x2c   : > { %p4102_p10 = scmp.ne.s32.totalorder %s4247_s19, %s4101_s17  ;;  %p4110_p0 = scmp.lt.s32.totalorder %s4101_s17, %s4101_s17 }
  0x2e   : > { %p4104_p11 = pnand %p4102_p10, %p4259_p7  ;;  %p4111_p1 = por %p4110_p0, %p4109_p13 }
  0x30   : > { %p4105_p12 = pneg %p4104_p11 }
  0x32   : > { %p4112_p4 = pnand %p4111_p1, %p4105_p12 }
  0x34   : > { %4115 = shalt.err (!%p4112_p4)
}
  0x35   : > { %3688 = dma.hbm_to_vmem [thread:$0]  (!%p4243_p5), %s5303_s4, 1024, %s4247_s19, [#allocation3], %s4163_s12, %s4163_s12, %s4164_s16  }
  0x36   : > { %s4116_s24 = scalar_lea.hbm %s5308_s9, 1024 }
  0x37   : > { %p4117_p6 = scmp.ne.s32.totalorder %s5308_s9, %s4116_s24  ;;  %p4123_p8 = scmp.lt.u32.totalorder %s4116_s24, %s5308_s9 }
  0x39   : > { %p4119_p2 = pnand %p4117_p6, %p4259_p7 }
  0x3b   : > { %p4120_p3 = pneg %p4119_p2 }
  0x3d   : > { %p4125_p9 = pnand %p4123_p8, %p4120_p3 }
  0x3f   : > { %4128 = shalt.err (!%p4125_p9)
}
  0x40   : > { %s4129_s19 = scalar_lea.vmem %s4249_s22, 1024  ;;  %p4137_p13 = scmp.lt.s32.totalorder %s4249_s22, %s4249_s22 }
  0x41   : > { %p4130_p10 = scmp.ne.s32.totalorder %s4249_s22, %s4129_s19  ;;  %p4138_p0 = scmp.lt.s32.totalorder %s4129_s19, %s4129_s19 }
  0x43   : > { %p4132_p11 = pnand %p4130_p10, %p4259_p7  ;;  %p4139_p1 = por %p4138_p0, %p4137_p13 }
  0x45   : > { %p4133_p12 = pneg %p4132_p11 }
  0x47   : > { %p4140_p4 = pnand %p4139_p1, %p4133_p12 }
  0x49   : > { %4143 = shalt.err (!%p4140_p4)
}
  0x4a   : > { %3694 = dma.hbm_to_vmem [thread:$0]  (!%p4243_p5), %s5308_s9, 1024, %s4249_s22, [#allocation5]  }
  0x4b   : > { %p5331_p6 = scmp.ne.s32.totalorder %s5328_s15, 0 }
  0x4c   : > { %p5332_p2 = scmp.eq.s32.totalorder (!%p5331_p6), %s4230_s14, 0 }
  0x4d   : > { %358 = sbr.rel (%p5331_p6) target bundleno = 2599 (0xa27), region = 60 }
  0x54   : > { %4149 = dma.done.wait (%p5332_p2), [#allocation3], 1024   ;;  %p5333_p7 = pmov %p5332_p2 }
  0x55   : > { %p5334_p3 = pmov %p5332_p2 }
  0x56   : > { %4151 = vsyncadd (%p5333_p7), [#allocation3], 4294966272 }
  0x57   : > { %4153 = dma.done.wait (%p5334_p3), [#allocation5], 3072   ;;  %p5335_p8 = pmov %p5332_p2 }
  0x58   : > { %v3718_v0 = vld [vmem:[%s5301_s2 + $0x40] sm:$0xff]   ;;  %s3175_s22 = sshll.u32 %s4230_s14, 4  ;;  %v3720_v2 = vld [vmem:[%s5301_s2 + $0x48] sm:$0xff]   ;;  %v3722_v4 = vld [vmem:[%s5301_s2 + $0x50] sm:$0xff]   ;;  %vm1151_vm0 = vcmask 523264   ;;  %p416_p9 = scmp.lt.s32.totalorder %s4230_s14, 1 }
  0x59   : > { %4155 = vsyncadd (%p5335_p8), [#allocation5], 4294964224  ;;  %v3719_v1 = vld [vmem:[%s5301_s2] sm:$0xff]   ;;  %3371 = vmatprep.subr.bf16.mxu0 %v3718_v0  ;;  %v3721_v3 = vld [vmem:[%s5301_s2 + $0x8] sm:$0xff]   ;;  %p410_p5 = scmp.lt.s32.totalorder %s3175_s22, 31  ;;  %vm1464_vm1 = vcmask 1041409  }
  0x5a   : > { %3372 = vmatpush3.bf16.msra.mxu0 %v3719_v1  ;;  %v3723_v5 = vld [vmem:[%s5301_s2 + $0x10] sm:$0xff]   ;;  %v3724_v6 = vld [vmem:[%s5301_s2 + $0x58] sm:$0xff]   ;;  %v3726_v8 = vld [vmem:[%s5301_s2 + $0x60] sm:$0xff]   ;;  %s5355_s14 = smov (!%p416_p9, %s4230_s14), 1  ;;  %vm1466_vm2 = vcmask 1042434   ;;  %vm1468_vm3 = vcmask 1043459  }
  0x5b   : > { %3373 = vmatprep.subr.bf16.mxu0 %v3720_v2  ;;  %s5353_s22 = smov (!%p410_p5, %s3175_s22), 31  ;;  %v3725_v7 = vld [vmem:[%s5301_s2 + $0x18] sm:$0xff]   ;;  %v3727_v9 = vld [vmem:[%s5301_s2 + $0x20] sm:$0xff]   ;;  %v3728_v10 = vld [vmem:[%s5301_s2 + $0x68] sm:$0xff]   ;;  %s3370_s20 = sshll.u32 %s5355_s14, 6  ;;  %vm1470_vm4 = vcmask 1044484  }
  0x5c   : > { %s3369_s16 = sshll.u32 %s5353_s22, 3  ;;  %v3729_v12 = vld [vmem:[%s5301_s2 + $0x28] sm:$0xff]   ;;  %v3730_v13 = vld [vmem:[%s5301_s2 + $0x70] sm:$0xff]   ;;  %v3732_v15 = vld [vmem:[%s5301_s2 + $0x78] sm:$0xff]   ;;  %s4644_s30 = scalar_lea.vmem %s5300_s1, %s3370_s20  ;;  %vm1472_vm5 = vcmask 1045509   ;;  %vm1474_vm6 = vcmask 1046534  }
  0x5d   : > { %s4362_s17 = scalar_lea.vmem %s5299_s0, %s3369_s16  ;;  %v3731_v14 = vld [vmem:[%s5301_s2 + $0x30] sm:$0xff]   ;;  %v3733_v16 = vld [vmem:[%s5301_s2 + $0x38] sm:$0xff]   ;;  %v3758_v17 = vld [vmem:[%s5302_s3] sm:$0xff]   ;;  %s4165_s16 = smov 64   ;;  %vm1476_vm7 = vcmask 1047559   ;;  %vm4167_vm8 = vmmov 0  }
  0x5e   : > { %3374 = vmatpush3.bf16.msra.mxu0 %v3721_v3  ;;  %v3736_v11 = vld [vmem:[%s4362_s17 + $0x4] ss:$8 sps:$4 sm:$0xff]   ;;  %v3734_v18 = vld [vmem:[%s4362_s17] ss:$8 sps:$4 sm:$0xff]   ;;  %v3737_v20 = vld [vmem:[%s4362_s17 + $0x14] ss:$8 sps:$4 sm:$0xff]   ;;  %3601 = vmatprep.subr.bf16.mxu1 %v3758_v17 }
  0x5f   : > { %3375 = vmatprep.subr.bf16.mxu0 %v3722_v4  ;;  %693 = vmatprep.mubr.bf16.mxu0 %v3736_v11  ;;  %v3759_v19 = vld [vmem:[%s5302_s3 + $0x8] sm:$0xff]   ;;  %v3760_v21 = vld [vmem:[%s5302_s3 + $0x10] sm:$0xff]   ;;  %v3761_v35 = vld [vmem:[%s5302_s3 + $0x18] sm:$0xff]   ;;  %s3180_s29 = sshll.u32 %s5355_s14, 3  ;;  %vm3066_vm9 = vcmask 48128  }
  0x60   : > { %3602 = vmatpush3.bf16.msra.mxu1 %v3758_v17  ;;  %v3739_v22 = vld [vmem:[%s4362_s17 + $0x10] ss:$8 sps:$4 sm:$0xff]   ;;  %v3740_v23 = vld [vmem:[%s4362_s17 + $0x24] ss:$8 sps:$4 sm:$0xff]   ;;  %v3742_v24 = vld [vmem:[%s4362_s17 + $0x20] ss:$8 sps:$4 sm:$0xff]  }
  0x61   : > { %3603 = vmatprep.subr.bf16.mxu1 %v3759_v19  ;;  %v3743_v25 = vld [vmem:[%s4362_s17 + $0x34] ss:$8 sps:$4 sm:$0xff]   ;;  %v3745_v26 = vld [vmem:[%s4362_s17 + $0x30] ss:$8 sps:$4 sm:$0xff]   ;;  %v3746_v27 = vld [vmem:[%s4362_s17 + $0x44] ss:$8 sps:$4 sm:$0xff]  }
  0x62   : > { %3376 = vmatpush3.bf16.msra.mxu0 %v3723_v5  ;;  %v3748_v28 = vld [vmem:[%s4362_s17 + $0x40] ss:$8 sps:$4 sm:$0xff]   ;;  %v3749_v29 = vld [vmem:[%s4362_s17 + $0x54] ss:$8 sps:$4 sm:$0xff]   ;;  %v3751_v30 = vld [vmem:[%s4362_s17 + $0x50] ss:$8 sps:$4 sm:$0xff]  }
  0x63   : > { %3377 = vmatprep.subr.bf16.mxu0 %v3724_v6  ;;  %v3752_v31 = vld [vmem:[%s4362_s17 + $0x64] ss:$8 sps:$4 sm:$0xff]   ;;  %v3754_v32 = vld [vmem:[%s4362_s17 + $0x60] ss:$8 sps:$4 sm:$0xff]   ;;  %v3755_v33 = vld [vmem:[%s4362_s17 + $0x74] ss:$8 sps:$4 sm:$0xff]  }
  0x64   : > { %3604 = vmatpush3.bf16.msra.mxu1 %v3759_v19  ;;  %v3757_v34 = vld [vmem:[%s4362_s17 + $0x70] ss:$8 sps:$4 sm:$0xff]   ;;  %v3762_v36 = vld [vmem:[%s5302_s3 + $0x20] sm:$0xff]   ;;  %v3763_v37 = vld [vmem:[%s5302_s3 + $0x28] sm:$0xff]  }
  0x65   : > { %3605 = vmatprep.subr.bf16.mxu1 %v3760_v21  ;;  %v3764_v38 = vld [vmem:[%s5302_s3 + $0x30] sm:$0xff]   ;;  %v3765_v39 = vld [vmem:[%s5302_s3 + $0x38] sm:$0xff]   ;;  %v4425_v42 = vld [vmem:[#allocation6] ss:$0 sm:$0xff] }
  0x66   : > { %3378 = vmatpush3.bf16.msra.mxu0 %v3725_v7 }
  0x67   : > { %3379 = vmatprep.subr.bf16.mxu0 %v3726_v8 }
  0x68   : > { %3606 = vmatpush3.bf16.msra.mxu1 %v3760_v21 }
  0x69   : > { %3607 = vmatprep.subr.bf16.mxu1 %v3761_v35 }
  0x6a   : > { %3380 = vmatpush3.bf16.msra.mxu0 %v3727_v9 }
  0x6b   : > { %3381 = vmatprep.subr.bf16.mxu0 %v3728_v10 }
  0x6c   : > { %3608 = vmatpush3.bf16.msra.mxu1 %v3761_v35 }
  0x6d   : > { %3609 = vmatprep.subr.bf16.mxu1 %v3762_v36 }
  0x6e   : > { %3382 = vmatpush3.bf16.msra.mxu0 %v3729_v12 }
  0x6f   : > { %3383 = vmatprep.subr.bf16.mxu0 %v3730_v13 }
  0x70   : > { %3610 = vmatpush3.bf16.msra.mxu1 %v3762_v36 }
  0x71   : > { %3611 = vmatprep.subr.bf16.mxu1 %v3763_v37 }
  0x72   : > { %3384 = vmatpush3.bf16.msra.mxu0 %v3731_v14 }
  0x73   : > { %3385 = vmatprep.subr.bf16.mxu0 %v3732_v15 }
  0x74   : > { %3612 = vmatpush3.bf16.msra.mxu1 %v3763_v37 }
  0x75   : > { %3613 = vmatprep.subr.bf16.mxu1 %v3764_v38 }
  0x76   : > { %3386 = vmatpush3.bf16.msra.mxu0 %v3733_v16 }
  0x78   : > { %3614 = vmatpush3.bf16.msra.mxu1 %v3764_v38 }
  0x79   : > { %694 = vmatmul.mubr.bf16.vlgmr.msra.gmra.mrb[0].mxu0 %v3734_v18  ;;  %3615 = vmatprep.subr.bf16.mxu1 %v3765_v39 }
  0x7a   : > { %701 = vmatprep.mubr.bf16.mxu0 %v3737_v20 }
  0x7c   : > { %3616 = vmatpush3.bf16.msra.mxu1 %v3765_v39 }
  0x81   : > { %702 = vmatmul.mubr.bf16.gmra.mrb[4].mxu0 %v3739_v22 }
  0x82   : > { %709 = vmatprep.mubr.bf16.mxu0 %v3740_v23 }
  0x89   : > { %710 = vmatmul.mubr.bf16.gmra.mrb[8].mxu0 %v3742_v24 }
  0x8a   : > { %717 = vmatprep.mubr.bf16.mxu0 %v3743_v25 }
  0x91   : > { %718 = vmatmul.mubr.bf16.gmra.mrb[12].mxu0 %v3745_v26 }
  0x92   : > { %725 = vmatprep.mubr.bf16.mxu0 %v3746_v27 }
  0x99   : > { %726 = vmatmul.mubr.bf16.gmra.mrb[16].mxu0 %v3748_v28 }
  0x9a   : > { %733 = vmatprep.mubr.bf16.mxu0 %v3749_v29 }
  0xa1   : > { %734 = vmatmul.mubr.bf16.gmra.mrb[20].mxu0 %v3751_v30 }
  0xa2   : > { %741 = vmatprep.mubr.bf16.mxu0 %v3752_v31 }
  0xa9   : > { %742 = vmatmul.mubr.bf16.gmra.mrb[24].mxu0 %v3754_v32 }
  0xaa   : > { %749 = vmatprep.mubr.bf16.mxu0 %v3755_v33 }
  0xb1   : > { %750 = vmatmul.mubr.bf16.gmra.mrb[28].mxu0 %v3757_v34 }
 0x14c   : > { %v3387_v40 = vpop.f32.mrb[0].mxu0 }
 0x14d   : > { %v3388_v41 = vpop.f32.mrb[1].mxu0 }
 0x14e   : > { %v3389_v43 = vadd.f32 %v3388_v41, %v3387_v40  ;;  %v3390_v44 = vpop.f32.mrb[2].mxu0 }
 0x14f   : > { %v3391_v45 = vpop.f32.mrb[3].mxu0 }
 0x150   : > { %v3392_v46 = vadd.f32 %v3391_v45, %v3390_v44  ;;  %v4428_v47 = vadd.f32 %v3389_v43, %v4425_v42 }
 0x152   : > { %v4431_v48 = vadd.f32 %v3392_v46, %v4425_v42  ;;  %v5327_v50 = vmax.f32 %v4428_v47, 0.0 }
 0x154   : > { %v3393_v49 = vpop.f32.mrb[4].mxu0  ;;  %v5326_v51 = vmax.f32 %v4431_v48, 0.0 }
 0x155   : > { %v3394_v52 = vpop.f32.mrb[5].mxu0 }
 0x156   : > { %v3395_v53 = vadd.f32 %v3394_v52, %v3393_v49  ;;  %v3396_v54 = vpop.f32.mrb[6].mxu0  ;;  %v774_v55 = vpack.c.bf16 %v5326_v51, %v5327_v50 }
 0x157   : > { %v3397_v56 = vpop.f32.mrb[7].mxu0 }
 0x158   : > { %v4440_v57 = vadd.f32 %v3395_v53, %v4425_v42  ;;  %v3398_v58 = vadd.f32 %v3397_v56, %v3396_v54  ;;  %3617 = vmatprep.mubr.bf16.mxu1 %v774_v55 }
 0x15a   : > { %v4443_v59 = vadd.f32 %v3398_v58, %v4425_v42  ;;  %v5325_v60 = vmax.f32 %v4440_v57, 0.0 }
 0x15c   : > { %v5324_v61 = vmax.f32 %v4443_v59, 0.0  ;;  %v3399_v62 = vpop.f32.mrb[8].mxu0 }
 0x15d   : > { %v3400_v63 = vpop.f32.mrb[9].mxu0 }
 0x15e   : > { %v3401_v0 = vadd.f32 %v3400_v63, %v3399_v62  ;;  %v3402_v1 = vpop.f32.mrb[10].mxu0  ;;  %v775_v2 = vpack.c.bf16 %v5324_v61, %v5325_v60 }
 0x15f   : > { %v3403_v3 = vpop.f32.mrb[11].mxu0 }
 0x160   : > { %v4452_v4 = vadd.f32 %v3401_v0, %v4425_v42  ;;  %v3404_v5 = vadd.f32 %v3403_v3, %v3402_v1  ;;  %3618 = vmatmul.mubr.bf16.vlgmr.msra.gmra.mrb[0].mxu1 %v775_v2 }
 0x162   : > { %v4455_v6 = vadd.f32 %v3404_v5, %v4425_v42  ;;  %v5323_v7 = vmax.f32 %v4452_v4, 0.0 }
 0x164   : > { %v5322_v8 = vmax.f32 %v4455_v6, 0.0  ;;  %v3405_v9 = vpop.f32.mrb[12].mxu0 }
 0x165   : > { %v3406_v10 = vpop.f32.mrb[13].mxu0 }
 0x166   : > { %v3407_v11 = vadd.f32 %v3406_v10, %v3405_v9  ;;  %v3408_v12 = vpop.f32.mrb[14].mxu0  ;;  %v776_v13 = vpack.c.bf16 %v5322_v8, %v5323_v7 }
 0x167   : > { %v3409_v14 = vpop.f32.mrb[15].mxu0 }
 0x168   : > { %v4464_v15 = vadd.f32 %v3407_v11, %v4425_v42  ;;  %v3410_v16 = vadd.f32 %v3409_v14, %v3408_v12  ;;  %3621 = vmatprep.mubr.bf16.mxu1 %v776_v13  ;;  %v4523_v14 = vld [vmem:[#allocation6 + $0x8] ss:$0 sm:$0xff] }
 0x16a   : > { %v4467_v17 = vadd.f32 %v3410_v16, %v4425_v42  ;;  %v5321_v18 = vmax.f32 %v4464_v15, 0.0 }
 0x16c   : > { %v5320_v19 = vmax.f32 %v4467_v17, 0.0  ;;  %v3411_v20 = vpop.f32.mrb[16].mxu0 }
 0x16d   : > { %v3412_v21 = vpop.f32.mrb[17].mxu0 }
 0x16e   : > { %v3413_v22 = vadd.f32 %v3412_v21, %v3411_v20  ;;  %v3414_v23 = vpop.f32.mrb[18].mxu0  ;;  %v777_v24 = vpack.c.bf16 %v5320_v19, %v5321_v18 }
 0x16f   : > { %v3415_v25 = vpop.f32.mrb[19].mxu0 }
 0x170   : > { %v4476_v26 = vadd.f32 %v3413_v22, %v4425_v42  ;;  %v3416_v27 = vadd.f32 %v3415_v25, %v3414_v23  ;;  %3622 = vmatmul.mubr.bf16.gmra.mrb[4].mxu1 %v777_v24 }
 0x172   : > { %v4479_v28 = vadd.f32 %v3416_v27, %v4425_v42  ;;  %v5318_v29 = vmax.f32 %v4476_v26, 0.0 }
 0x174   : > { %v5319_v30 = vmax.f32 %v4479_v28, 0.0  ;;  %v3417_v31 = vpop.f32.mrb[20].mxu0 }
 0x175   : > { %v3418_v32 = vpop.f32.mrb[21].mxu0 }
 0x176   : > { %v3419_v33 = vadd.f32 %v3418_v32, %v3417_v31  ;;  %v3420_v34 = vpop.f32.mrb[22].mxu0  ;;  %v778_v35 = vpack.c.bf16 %v5319_v30, %v5318_v29 }
 0x177   : > { %v3421_v36 = vpop.f32.mrb[23].mxu0 }
 0x178   : > { %v4488_v37 = vadd.f32 %v3419_v33, %v4425_v42  ;;  %v3422_v38 = vadd.f32 %v3421_v36, %v3420_v34  ;;  %3625 = vmatprep.mubr.bf16.mxu1 %v778_v35 }
 0x17a   : > { %v4491_v39 = vadd.f32 %v3422_v38, %v4425_v42  ;;  %v5316_v40 = vmax.f32 %v4488_v37, 0.0 }
 0x17c   : > { %v5317_v41 = vmax.f32 %v4491_v39, 0.0  ;;  %v3423_v43 = vpop.f32.mrb[24].mxu0 }
 0x17d   : > { %v3424_v44 = vpop.f32.mrb[25].mxu0 }
 0x17e   : > { %v3425_v45 = vadd.f32 %v3424_v44, %v3423_v43  ;;  %v3426_v46 = vpop.f32.mrb[26].mxu0  ;;  %v779_v49 = vpack.c.bf16 %v5317_v41, %v5316_v40 }
 0x17f   : > { %v3427_v52 = vpop.f32.mrb[27].mxu0 }
 0x180   : > { %v4500_v53 = vadd.f32 %v3425_v45, %v4425_v42  ;;  %v3428_v54 = vadd.f32 %v3427_v52, %v3426_v46  ;;  %3626 = vmatmul.mubr.bf16.gmra.mrb[8].mxu1 %v779_v49 }
 0x182   : > { %v4503_v55 = vadd.f32 %v3428_v54, %v4425_v42  ;;  %v5315_v56 = vmax.f32 %v4500_v53, 0.0 }
 0x184   : > { %v5314_v58 = vmax.f32 %v4503_v55, 0.0  ;;  %v3429_v62 = vpop.f32.mrb[28].mxu0 }
 0x185   : > { %v3430_v63 = vpop.f32.mrb[29].mxu0 }
 0x186   : > { %v3431_v0 = vadd.f32 %v3430_v63, %v3429_v62  ;;  %v3432_v1 = vpop.f32.mrb[30].mxu0  ;;  %v780_v2 = vpack.c.bf16 %v5314_v58, %v5315_v56 }
 0x187   : > { %v3433_v3 = vpop.f32.mrb[31].mxu0 }
 0x188   : > { %v4512_v5 = vadd.f32 %v3431_v0, %v4425_v42  ;;  %v3434_v9 = vadd.f32 %v3433_v3, %v3432_v1  ;;  %3629 = vmatprep.mubr.bf16.mxu1 %v780_v2 }
 0x18a   : > { %v4515_v10 = vadd.f32 %v3434_v9, %v4425_v42  ;;  %v5313_v11 = vmax.f32 %v4512_v5, 0.0 }
 0x18c   : > { %v5312_v12 = vmax.f32 %v4515_v10, 0.0 }
 0x18e   : > { %v781_v13 = vpack.c.bf16 %v5312_v12, %v5313_v11 }
 0x190   : > { %3630 = vmatmul.mubr.bf16.gmra.mrb[12].mxu1 %v781_v13 }
 0x233   : > { %v3619_v16 = vpop.f32.mrb[0].mxu1 }
 0x234   : > { %v4526_v20 = vadd.f32 %v3619_v16, %v4523_v14  ;;  %v880_v21 = vpop.f32.mrb[1].mxu1 }
 0x235   : > { %v4529_v42 = vadd.f32 %v880_v21, %v4523_v14  ;;  %v3620_v22 = vpop.f32.mrb[2].mxu1 }
 0x236   : > { %v3223_v23 = vmul.f32 -1.442695, %v4526_v20  ;;  %v4533_v24 = vadd.f32 %v3620_v22, %v4523_v14  ;;  %v883_v25 = vpop.f32.mrb[3].mxu1 }
 0x237   : > { %v3221_v27 = vmul.f32 -1.442695, %v4529_v42  ;;  %v4537_v31 = vadd.f32 %v883_v25, %v4523_v14 }
 0x238   : > { %3902 = vpow2.f32 %v3223_v23  ;;  %v3224_v32 = vmul.f32 -1.442695, %v4533_v24 }
 0x239   : > { %3904 = vpow2.f32 %v3221_v27  ;;  %v3222_v33 = vmul.f32 -1.442695, %v4537_v31 }
 0x23a   : > { %3906 = vpow2.f32 %v3224_v32 }
 0x23b   : > { %3908 = vpow2.f32 %v3222_v33 }
 0x242   : > { %v3903_v34 = vpop.eup %3902 }
 0x243   : > { %v3905_v35 = vpop.eup %3904  ;;  %v1009_v36 = vadd.f32 1.0, %v3903_v34  ;;  %v3623_v38 = vpop.f32.mrb[4].mxu1 }
 0x244   : > { %v1007_v43 = vadd.f32 1.0, %v3905_v35  ;;  %v4542_v44 = vadd.f32 %v3623_v38, %v4523_v14  ;;  %v896_v45 = vpop.f32.mrb[5].mxu1  ;;  %v3907_v46 = vpop.eup %3906 }
 0x245   : > { %3910 = vrcp.f32 %v1009_v36  ;;  %v4545_v49 = vadd.f32 %v896_v45, %v4523_v14  ;;  %v3624_v52 = vpop.f32.mrb[6].mxu1  ;;  %v1010_v54 = vadd.f32 1.0, %v3907_v46  ;;  %v3909_v1 = vpop.eup %3908 }
 0x246   : > { %3912 = vrcp.f32 %v1007_v43  ;;  %v3227_v62 = vmul.f32 -1.442695, %v4542_v44  ;;  %v4549_v63 = vadd.f32 %v3624_v52, %v4523_v14  ;;  %v899_v0 = vpop.f32.mrb[7].mxu1  ;;  %v1008_v2 = vadd.f32 1.0, %v3909_v1 }
 0x247   : > { %3914 = vrcp.f32 %v1010_v54  ;;  %v3225_v3 = vmul.f32 -1.442695, %v4545_v49  ;;  %v4553_v9 = vadd.f32 %v899_v0, %v4523_v14 }
 0x248   : > { %3916 = vpow2.f32 %v3227_v62  ;;  %v3228_v13 = vmul.f32 -1.442695, %v4549_v63 }
 0x249   : > { %3918 = vrcp.f32 %v1008_v2  ;;  %v3226_v16 = vmul.f32 -1.442695, %v4553_v9 }
 0x24a   : > { %3920 = vpow2.f32 %v3225_v3 }
 0x24b   : > { %3922 = vpow2.f32 %v3228_v13 }
 0x24c   : > { %3924 = vpow2.f32 %v3226_v16 }
 0x24f   : > { %v3911_v21 = vpop.eup %3910 }
 0x250   : > { %v3913_v22 = vpop.eup %3912  ;;  %1075 = vrot.lane.b32.xlu1 %v3911_v21, %s4165_s16 }
 0x251   : > { %1071 = vrot.lane.b32.xlu0 %v3913_v22, %s4165_s16  ;;  %v3915_v23 = vpop.eup %3914 }
 0x252   : > { %v3917_v25 = vpop.eup %3916 }
 0x253   : > { %v3627_v27 = vpop.f32.mrb[8].mxu1  ;;  %v3919_v32 = vpop.eup %3918  ;;  %v1013_v33 = vadd.f32 1.0, %v3917_v25 }
 0x254   : > { %v4560_v34 = vadd.f32 %v3627_v27, %v4523_v14  ;;  %1077 = vrot.lane.b32.xlu1 %v3915_v23, %s4165_s16  ;;  %v912_v35 = vpop.f32.mrb[9].mxu1  ;;  %v3921_v43 = vpop.eup %3920 }
 0x255   : > { %v4564_v36 = vadd.f32 %v912_v35, %v4523_v14  ;;  %v3628_v38 = vpop.f32.mrb[10].mxu1  ;;  %1073 = vrot.lane.b32.xlu0 %v3919_v32, %s4165_s16  ;;  %3926 = vrcp.f32 %v1013_v33  ;;  %v1011_v52 = vadd.f32 1.0, %v3921_v43  ;;  %v3923_v62 = vpop.eup %3922 }
 0x256   : > { %v3231_v45 = vmul.f32 -1.442695, %v4560_v34  ;;  %v915_v46 = vpop.f32.mrb[11].mxu1  ;;  %v4569_v54 = vadd.f32 %v3628_v38, %v4523_v14  ;;  %v1014_v1 = vadd.f32 1.0, %v3923_v62  ;;  %v3925_v3 = vpop.eup %3924 }
 0x257   : > { %v3229_v0 = vmul.f32 -1.442695, %v4564_v36  ;;  %v4573_v2 = vadd.f32 %v915_v46, %v4523_v14  ;;  %v1012_v13 = vadd.f32 1.0, %v3925_v3 }
 0x258   : > { %3928 = vpow2.f32 %v3231_v45  ;;  %v3232_v16 = vmul.f32 -1.442695, %v4569_v54 }
 0x259   : > { %3930 = vrcp.f32 %v1011_v52  ;;  %v3230_v21 = vmul.f32 -1.442695, %v4573_v2 }
 0x25a   : > { %3932 = vrcp.f32 %v1014_v1 }
 0x25b   : > { %3934 = vpow2.f32 %v3229_v0 }
 0x25c   : > { %3936 = vrcp.f32 %v1012_v13 }
 0x25d   : > { %3938 = vpow2.f32 %v3232_v16 }
 0x25e   : > { %3940 = vpow2.f32 %v3230_v21 }
 0x25f   : > { %v3927_v22 = vpop.eup %3926 }
 0x260   : > { %1083 = vrot.lane.b32.xlu0 %v3927_v22, %s4165_s16 }
 0x262   : > { %v3929_v23 = vpop.eup %3928 }
 0x263   : > { %v1017_v25 = vadd.f32 1.0, %v3929_v23  ;;  %v3631_v27 = vpop.f32.mrb[12].mxu1  ;;  %v3931_v32 = vpop.eup %3930 }
 0x264   : > { %v4579_v33 = vadd.f32 %v3631_v27, %v4523_v14  ;;  %v928_v35 = vpop.f32.mrb[13].mxu1  ;;  %v3933_v38 = vpop.eup %3932  ;;  %1079 = vrot.lane.b32.xlu0 %v3931_v32, %s4165_s16 }
 0x265   : > { %3942 = vrcp.f32 %v1017_v25  ;;  %v4582_v43 = vadd.f32 %v928_v35, %v4523_v14  ;;  %v3632_v45 = vpop.f32.mrb[14].mxu1  ;;  %v3935_v46 = vpop.eup %3934  ;;  %1085 = vrot.lane.b32.xlu1 %v3933_v38, %s4165_s16 }
 0x266   : > { %v3235_v52 = vmul.f32 -1.442695, %v4579_v33  ;;  %v4588_v62 = vadd.f32 %v3632_v45, %v4523_v14  ;;  %v931_v0 = vpop.f32.mrb[15].mxu1  ;;  %v1015_v1 = vadd.f32 1.0, %v3935_v46  ;;  %v3937_v13 = vpop.eup %3936 }
 0x267   : > { %v3233_v3 = vmul.f32 -1.442695, %v4582_v43  ;;  %v4592_v16 = vadd.f32 %v931_v0, %v4523_v14  ;;  %v3939_v21 = vpop.eup %3938 }
 0x268   : > { %3944 = vpow2.f32 %v3235_v52  ;;  %v1018_v22 = vadd.f32 1.0, %v3939_v21  ;;  %v3236_v23 = vmul.f32 -1.442695, %v4588_v62  ;;  %v3941_v25 = vpop.eup %3940 }
 0x269   : > { %3946 = vrcp.f32 %v1015_v1  ;;  %1081 = vrot.lane.b32.xlu1 %v3937_v13, %s4165_s16  ;;  %v1016_v27 = vadd.f32 1.0, %v3941_v25  ;;  %v3234_v32 = vmul.f32 -1.442695, %v4592_v16 }
 0x26a   : > { %3948 = vpow2.f32 %v3233_v3 }
 0x26b   : > { %3950 = vrcp.f32 %v1018_v22 }
 0x26c   : > { %3952 = vpow2.f32 %v3236_v23 }
 0x26d   : > { %3954 = vrcp.f32 %v1016_v27 }
 0x26e   : > { %3956 = vpow2.f32 %v3234_v32 }
 0x26f   : > { %v3943_v35 = vpop.eup %3942 }
 0x270   : > { %1091 = vrot.lane.b32.xlu0 %v3943_v35, %s4165_s16 }
 0x272   : > { %v3945_v14 = vpop.eup %3944 }
 0x273   : > { %v3947_v38 = vpop.eup %3946  ;;  %v1021_v0 = vadd.f32 1.0, %v3945_v14 }
 0x274   : > { %v3949_v45 = vpop.eup %3948  ;;  %1087 = vrot.lane.b32.xlu0 %v3947_v38, %s4165_s16  ;;  %v4609_v38 = vld [vmem:[#allocation6 + $0x1] ss:$0 sm:$0xff] }
 0x275   : > { %v1019_v46 = vadd.f32 1.0, %v3949_v45  ;;  %v3951_v52 = vpop.eup %3950 }
 0x276   : > { %1093 = vrot.lane.b32.xlu1 %v3951_v52, %s4165_s16  ;;  %v3953_v1 = vpop.eup %3952 }
 0x277   : > { %3958 = vrcp.f32 %v1019_v46  ;;  %v3955_v3 = vpop.eup %3954  ;;  %v1022_v22 = vadd.f32 1.0, %v3953_v1 }
 0x278   : > { %v3957_v13 = vpop.eup %3956  ;;  %3960 = vrcp.f32 %v1021_v0 }
 0x279   : > { %v1020_v21 = vadd.f32 1.0, %v3957_v13 }
 0x27a   : > { %1089 = vrot.lane.b32.xlu1 %v3955_v3, %s4165_s16 }
 0x27b   : > { %3962 = vrcp.f32 %v1020_v21 }
 0x27c   : > { %3964 = vrcp.f32 %v1022_v22 }
 0x27d   : > { %3966 = vtanh.f32 %v4526_v20 }
 0x27e   : > { %3968 = vtanh.f32 %v4529_v42 }
 0x27f   : > { %3970 = vtanh.f32 %v4533_v24 }
 0x280   : > { %3972 = vtanh.f32 %v4537_v31 }
 0x281   : > { %v3959_v23 = vpop.eup %3958  ;;  %3974 = vtanh.f32 %v4542_v44 }
 0x282   : > { %1095 = vrot.lane.b32.xlu0 %v3959_v23, %s4165_s16  ;;  %v3961_v25 = vpop.eup %3960  ;;  %3976 = vtanh.f32 %v4545_v49 }
 0x283   : > { %3978 = vtanh.f32 %v4549_v63 }
 0x284   : > { %3980 = vtanh.f32 %v4553_v9 }
 0x285   : > { %v3963_v27 = vpop.eup %3962  ;;  %3982 = vtanh.f32 %v4560_v34 }
 0x286   : > { %1099 = vrot.lane.b32.xlu0 %v3961_v25, %s4165_s16  ;;  %1097 = vrot.lane.b32.xlu1 %v3963_v27, %s4165_s16  ;;  %v3965_v32 = vpop.eup %3964  ;;  %3984 = vtanh.f32 %v4564_v36 }
 0x287   : > { %v3967_v35 = vpop.eup %3966  ;;  %3986 = vtanh.f32 %v4569_v54 }
 0x288   : > { %v3969_v45 = vpop.eup %3968  ;;  %3988 = vtanh.f32 %v4573_v2 }
 0x289   : > { %v3971_v3 = vpop.eup %3970  ;;  %3990 = vtanh.f32 %v4582_v43 }
 0x28a   : > { %1101 = vrot.lane.b32.xlu1 %v3965_v32, %s4165_s16  ;;  %v3973_v20 = vpop.eup %3972  ;;  %3992 = vtanh.f32 %v4579_v33  ;;  %s424_s16 = scalar_lea.vmem %s5309_s10, %s3180_s29 }
 0x28b   : > { %v3975_v44 = vpop.eup %3974  ;;  %3994 = vtanh.f32 %v4592_v16 }
 0x28c   : > { %3996 = vtanh.f32 %v4588_v62 }
 0x2c2   : > { %v1076_v14 = vpop.permute.xlu1 %1075 }
 0x2c3   : > { %v1121_v46 = vmul.f32 %v3967_v35, %v1076_v14  ;;  %v1072_v52 = vpop.permute.xlu0 %1071 }
 0x2c4   : > { %v1119_v0 = vmul.f32 %v3969_v45, %v1072_v52  ;;  %v3977_v52 = vpop.eup %3976 }
 0x2c5   : > { %v1137_v1 = vmul.f32 %v1121_v46, %v4609_v38 }
 0x2c6   : > { %v1078_v13 = vpop.permute.xlu1 %1077  ;;  %v1135_v31 = vmul.f32 %v1119_v0, %v4609_v38 }
 0x2c7   : > { %v1122_v21 = vmul.f32 %v3971_v3, %v1078_v13  ;;  %v1074_v42 = vpop.permute.xlu0 %1073  ;;  %v1158_v24 = vsel %vm1151_vm0, %v1137_v1, 0.0  ;;  %v3979_v1 = vpop.eup %3978 }
 0x2c8   : > { %v1120_v22 = vmul.f32 %v3973_v20, %v1074_v42  ;;  %1159 = vadd.xlane.f32.xlu0 %v1158_v24  ;;  %v1152_v25 = vsel %vm1151_vm0, %v1135_v31, 0.0 }
 0x2c9   : > { %v1138_v27 = vmul.f32 %v1122_v21, %v4609_v38  ;;  %v3981_v21 = vpop.eup %3980 }
 0x2ca   : > { %v1136_v23 = vmul.f32 %v1120_v22, %v4609_v38 }
 0x2cb   : > { %v1161_v35 = vsel %vm1151_vm0, %v1138_v27, 0.0 }
 0x2cc   : > { %1153 = vadd.xlane.f32.xlu0 %v1152_v25  ;;  %v1155_v32 = vsel %vm1151_vm0, %v1136_v23, 0.0  ;;  %v3983_v25 = vpop.eup %3982 }
 0x2cd   : > { %1156 = vadd.xlane.f32.xlu1 %v1155_v32 }
 0x2d0   : > { %1162 = vadd.xlane.f32.xlu0 %v1161_v35  ;;  %v3985_v35 = vpop.eup %3984 }
 0x2d2   : > { %v1084_v14 = vpop.permute.xlu0 %1083 }
 0x2d3   : > { %v1125_v45 = vmul.f32 %v3975_v44, %v1084_v14 }
 0x2d5   : > { %v1141_v46 = vmul.f32 %v1125_v45, %v4609_v38  ;;  %v3987_v45 = vpop.eup %3986 }
 0x2d6   : > { %v1080_v0 = vpop.permute.xlu0 %1079 }
 0x2d7   : > { %v1086_v49 = vpop.permute.xlu1 %1085  ;;  %v1123_v3 = vmul.f32 %v3977_v52, %v1080_v0  ;;  %v1170_v63 = vsel %vm1151_vm0, %v1141_v46, 0.0  ;;  %v4649_v52 = vld [vmem:[%s4644_s30] sm:$0xff]  ;;  %v4652_v0 = vld [vmem:[%s4644_s30 + $0x8] sm:$0xff] }
 0x2d8   : > { %v1126_v13 = vmul.f32 %v3979_v1, %v1086_v49  ;;  %1171 = vadd.xlane.f32.xlu1 %v1170_v63  ;;  %v1719_v63 = vadd.f32 %v4652_v0, %v4649_v52 }
 0x2d9   : > { %v1139_v9 = vmul.f32 %v1123_v3, %v4609_v38 }
 0x2da   : > { %v1142_v20 = vmul.f32 %v1126_v13, %v4609_v38  ;;  %v3989_v13 = vpop.eup %3988 }
 0x2db   : > { %v1082_v42 = vpop.permute.xlu1 %1081  ;;  %v1164_v24 = vsel %vm1151_vm0, %v1139_v9, 0.0 }
 0x2dc   : > { %v1124_v31 = vmul.f32 %v3981_v21, %v1082_v42  ;;  %v1173_v34 = vsel %vm1151_vm0, %v1142_v20, 0.0  ;;  %1165 = vadd.xlane.f32.xlu1 %v1164_v24  ;;  %v4660_v20 = vld [vmem:[%s4644_s30 + $0x10] sm:$0xff] }
 0x2dd   : > { %1174 = vadd.xlane.f32.xlu0 %v1173_v34  ;;  %v1720_v24 = vadd.f32 %v1719_v63, %v4660_v20  ;;  %v4687_v63 = vld [vmem:[%s4644_s30 + $0x30] sm:$0xff] }
 0x2de   : > { %v1140_v22 = vmul.f32 %v1124_v31, %v4609_v38  ;;  %v4668_v31 = vld [vmem:[%s4644_s30 + $0x18] sm:$0xff] }
 0x2e0   : > { %v1167_v23 = vsel %vm1151_vm0, %v1140_v22, 0.0  ;;  %v3991_v22 = vpop.eup %3990 }
 0x2e1   : > { %1168 = vadd.xlane.f32.xlu0 %v1167_v23  ;;  %v1721_v23 = vadd.f32 %v1720_v24, %v4668_v31 }
 0x2e2   : > { %v1092_v36 = vpop.permute.xlu0 %1091 }
 0x2e3   : > { %v1129_v27 = vmul.f32 %v3983_v25, %v1092_v36  ;;  %v4674_v36 = vld [vmem:[%s4644_s30 + $0x20] sm:$0xff] }
 0x2e5   : > { %v1145_v32 = vmul.f32 %v1129_v27, %v4609_v38  ;;  %v3993_v27 = vpop.eup %3992 }
 0x2e6   : > { %v1088_v44 = vpop.permute.xlu0 %1087 }
 0x2e7   : > { %v1127_v54 = vmul.f32 %v3985_v35, %v1088_v44  ;;  %v1182_v14 = vsel %vm1151_vm0, %v1145_v32, 0.0  ;;  %v1722_v35 = vadd.f32 %v1721_v23, %v4674_v36 }
 0x2e8   : > { %1183 = vadd.xlane.f32.xlu1 %v1182_v14  ;;  %v1094_v2 = vpop.permute.xlu1 %1093  ;;  %v4680_v14 = vld [vmem:[%s4644_s30 + $0x28] sm:$0xff] }
 0x2e9   : > { %v1143_v46 = vmul.f32 %v1127_v54, %v4609_v38  ;;  %v1130_v1 = vmul.f32 %v3987_v45, %v1094_v2  ;;  %v3995_v45 = vpop.eup %3994 }
 0x2eb   : > { %v1176_v49 = vsel %vm1151_vm0, %v1143_v46, 0.0  ;;  %v1146_v3 = vmul.f32 %v1130_v1, %v4609_v38  ;;  %v1723_v1 = vadd.f32 %v1722_v35, %v4680_v14 }
 0x2ec   : > { %1177 = vadd.xlane.f32.xlu1 %v1176_v49  ;;  %v1090_v9 = vpop.permute.xlu1 %1089 }
 0x2ed   : > { %v1128_v21 = vmul.f32 %v3989_v13, %v1090_v9  ;;  %v1185_v43 = vsel %vm1151_vm0, %v1146_v3, 0.0  ;;  %v3997_v13 = vpop.eup %3996 }
 0x2ee   : > { %1186 = vadd.xlane.f32.xlu0 %v1185_v43 }
 0x2ef   : > { %v1144_v42 = vmul.f32 %v1128_v21, %v4609_v38 }
 0x2f1   : > { %v1179_v34 = vsel %vm1151_vm0, %v1144_v42, 0.0  ;;  %v1724_v42 = vadd.f32 %v1723_v1, %v4687_v63 }
 0x2f2   : > { %1180 = vadd.xlane.f32.xlu0 %v1179_v34  ;;  %v4693_v34 = vld [vmem:[%s4644_s30 + $0x38] sm:$0xff] }
 0x2f4   : > { %v1096_v33 = vpop.permute.xlu0 %1095 }
 0x2f5   : > { %v1131_v25 = vmul.f32 %v3991_v22, %v1096_v33  ;;  %v1725_v33 = vadd.f32 %v1724_v42, %v4693_v34  ;;  %v3771_v42 = vld [vmem:[%s5304_s5 + $0x10] sm:$0xff]  }
 0x2f7   : > { %v1147_v16 = vmul.f32 %v1131_v25, %v4609_v38 }
 0x2f8   : > { %v1100_v32 = vpop.permute.xlu0 %1099  ;;  %v1098_v62 = vpop.permute.xlu1 %1097 }
 0x2f9   : > { %v1133_v44 = vmul.f32 %v3993_v27, %v1100_v32  ;;  %v1188_v54 = vsel %vm1151_vm0, %v1147_v16, 0.0  ;;  %v1132_v2 = vmul.f32 %v3995_v45, %v1098_v62  ;;  %v3767_v45 = vld [vmem:[%s5304_s5] sm:$0xff]   ;;  %v3768_v62 = vld [vmem:[%s5304_s5 + $0x48] sm:$0xff]  }
 0x2fa   : > { %1189 = vadd.xlane.f32.xlu1 %v1188_v54 }
 0x2fb   : > { %v1149_v46 = vmul.f32 %v1133_v44, %v4609_v38  ;;  %v1148_v49 = vmul.f32 %v1132_v2, %v4609_v38 }
 0x2fc   : > { %v1102_v9 = vpop.permute.xlu1 %1101 }
 0x2fd   : > { %v1194_v3 = vsel %vm1151_vm0, %v1149_v46, 0.0  ;;  %v1134_v21 = vmul.f32 %v3997_v13, %v1102_v9  ;;  %v1191_v43 = vsel %vm1151_vm0, %v1148_v49, 0.0  ;;  %v3769_v49 = vld [vmem:[%s5304_s5 + $0x8] sm:$0xff]   ;;  %v3770_v13 = vld [vmem:[%s5304_s5 + $0x50] sm:$0xff]  }
 0x2fe   : > { %1195 = vadd.xlane.f32.xlu1 %v1194_v3  ;;  %1192 = vadd.xlane.f32.xlu0 %v1191_v43 }
 0x2ff   : > { %v1150_v24 = vmul.f32 %v1134_v21, %v4609_v38  ;;  %v3766_v38 = vld [vmem:[%s5304_s5 + $0x40] sm:$0xff]  }
 0x300   : > { %3460 = vmatprep.subr.bf16.mxu0 %v3766_v38 }
 0x301   : > { %v1197_v22 = vsel %vm1151_vm0, %v1150_v24, 0.0  ;;  %3461 = vmatpush3.bf16.msra.mxu0 %v3767_v45 }
 0x302   : > { %1198 = vadd.xlane.f32.xlu0 %v1197_v22  ;;  %3462 = vmatprep.subr.bf16.mxu0 %v3768_v62  ;;  %v3772_v22 = vld [vmem:[%s5304_s5 + $0x58] sm:$0xff]  }
 0x305   : > { %3463 = vmatpush3.bf16.msra.mxu0 %v3769_v49 }
 0x306   : > { %1726 = vadd.xlane.f32.xlu0 %v1725_v33  ;;  %3464 = vmatprep.subr.bf16.mxu0 %v3770_v13 }
 0x309   : > { %3465 = vmatpush3.bf16.msra.mxu0 %v3771_v42 }
 0x30a   : > { %3466 = vmatprep.subr.bf16.mxu0 %v3772_v22 }
 0x355   : > { %v1160_v23 = vpop.xlane.xlu0 %1159 }
 0x359   : > { %v1154_v25 = vpop.xlane.xlu0 %1153 }
 0x35a   : > { %v1157_v16 = vpop.xlane.xlu1 %1156 }
 0x35b   : > { %v1200_v27 = vmax.f32 %v1154_v25, %v1157_v16 }
 0x35d   : > { %v1201_v32 = vrot.slane %v1200_v27, 4  ;;  %v1163_v35 = vpop.xlane.xlu0 %1162 }
 0x35e   : > { %v1207_v44 = vmax.f32 %v1160_v23, %v1163_v35 }
 0x35f   : > { %v1202_v54 = vmax.f32 %v1200_v27, %v1201_v32 }
 0x360   : > { %v1208_v2 = vrot.slane %v1207_v44, 4 }
 0x361   : > { %v1203_v46 = vrot.slane %v1202_v54, 2 }
 0x362   : > { %v1209_v1 = vmax.f32 %v1207_v44, %v1208_v2 }
 0x363   : > { %v1204_v3 = vmax.f32 %v1202_v54, %v1203_v46 }
 0x364   : > { %v1210_v9 = vrot.slane %v1209_v1, 2 }
 0x365   : > { %v1205_v21 = vrot.slane %v1204_v3, 1  ;;  %v1172_v27 = vpop.xlane.xlu1 %1171 }
 0x366   : > { %v1211_v43 = vmax.f32 %v1209_v1, %v1210_v9 }
 0x367   : > { %v1206_v24 = vmax.f32 %v1204_v3, %v1205_v21 }
 0x368   : > { %v1212_v33 = vrot.slane %v1211_v43, 1 }
 0x369   : > { %v1256_v32 = vsub.f32 %v1154_v25, %v1206_v24  ;;  %v1257_v54 = vsub.f32 %v1157_v16, %v1206_v24  ;;  %v1166_v3 = vpop.xlane.xlu1 %1165 }
 0x36a   : > { %v1213_v44 = vmax.f32 %v1211_v43, %v1212_v33  ;;  %v1175_v38 = vpop.xlane.xlu0 %1174 }
 0x36b   : > { %v1221_v62 = vmax.f32 %v1172_v27, %v1175_v38  ;;  %v1272_v46 = vmul.f32 1.442695, %v1256_v32  ;;  %v1274_v49 = vmul.f32 1.442695, %v1257_v54 }
 0x36c   : > { %v1258_v45 = vsub.f32 %v1160_v23, %v1213_v44  ;;  %v1259_v2 = vsub.f32 %v1163_v35, %v1213_v44 }
 0x36d   : > { %v1222_v1 = vrot.slane %v1221_v62, 4  ;;  %3998 = vpow2.f32 %v1272_v46 }
 0x36e   : > { %v1169_v13 = vpop.xlane.xlu0 %1168  ;;  %v1276_v9 = vmul.f32 1.442695, %v1258_v45  ;;  %v1278_v11 = vmul.f32 1.442695, %v1259_v2  ;;  %4000 = vpow2.f32 %v1274_v49 }
 0x36f   : > { %v1223_v21 = vmax.f32 %v1221_v62, %v1222_v1  ;;  %v1214_v12 = vmax.f32 %v1166_v3, %v1169_v13 }
 0x370   : > { %4002 = vpow2.f32 %v1276_v9 }
 0x371   : > { %v1224_v58 = vrot.slane %v1223_v21, 2  ;;  %v1215_v25 = vrot.slane %v1214_v12, 4  ;;  %4004 = vpow2.f32 %v1278_v11 }
 0x373   : > { %v1225_v16 = vmax.f32 %v1223_v21, %v1224_v58  ;;  %v1216_v43 = vmax.f32 %v1214_v12, %v1215_v25 }
 0x375   : > { %v1226_v23 = vrot.slane %v1225_v16, 1  ;;  %v1217_v42 = vrot.slane %v1216_v43, 2  ;;  %v1184_v44 = vpop.xlane.xlu1 %1183 }
 0x377   : > { %v1227_v35 = vmax.f32 %v1225_v16, %v1226_v23  ;;  %v1218_v24 = vmax.f32 %v1216_v43, %v1217_v42  ;;  %v4718_v54 = vpop.eup %3998 }
 0x378   : > { %v4720_v1 = vpop.eup %4000 }
 0x379   : > { %v1262_v22 = vsub.f32 %v1172_v27, %v1227_v35  ;;  %v1263_v33 = vsub.f32 %v1175_v38, %v1227_v35  ;;  %v1219_v32 = vrot.slane %v1218_v24, 1  ;;  %v1304_v38 = vadd.f32 %v4720_v1, %v4718_v54  ;;  %v1178_v16 = vpop.xlane.xlu1 %1177 }
 0x37a   : > { %v4722_v58 = vpop.eup %4002 }
 0x37b   : > { %v1284_v45 = vmul.f32 1.442695, %v1262_v22  ;;  %v1286_v62 = vmul.f32 1.442695, %v1263_v33  ;;  %v1220_v2 = vmax.f32 %v1218_v24, %v1219_v32  ;;  %v1187_v46 = vpop.xlane.xlu0 %1186  ;;  %v4724_v9 = vpop.eup %4004  ;;  %v1305_v24 = vrot.slane %v1304_v38, 4 }
 0x37c   : > { %v1235_v49 = vmax.f32 %v1184_v44, %v1187_v46  ;;  %v1311_v35 = vadd.f32 %v4724_v9, %v4722_v58 }
 0x37d   : > { %4006 = vpow2.f32 %v1284_v45  ;;  %v1260_v11 = vsub.f32 %v1166_v3, %v1220_v2  ;;  %v1261_v12 = vsub.f32 %v1169_v13, %v1220_v2 }
 0x37e   : > { %4008 = vpow2.f32 %v1286_v62  ;;  %v1236_v27 = vrot.slane %v1235_v49, 4  ;;  %v1312_v32 = vrot.slane %v1311_v35, 4 }
 0x37f   : > { %v1280_v21 = vmul.f32 1.442695, %v1260_v11  ;;  %v1282_v25 = vmul.f32 1.442695, %v1261_v12  ;;  %v1181_v43 = vpop.xlane.xlu0 %1180  ;;  %v1306_v11 = vadd.f32 %v1305_v24, %v1304_v38 }
 0x380   : > { %v1237_v23 = vmax.f32 %v1235_v49, %v1236_v27  ;;  %v1228_v42 = vmax.f32 %v1178_v16, %v1181_v43  ;;  %v1313_v56 = vadd.f32 %v1312_v32, %v1311_v35 }
 0x381   : > { %4010 = vpow2.f32 %v1280_v21 }
 0x382   : > { %4012 = vpow2.f32 %v1282_v25  ;;  %v1238_v3 = vrot.slane %v1237_v23, 2  ;;  %v1229_v13 = vrot.slane %v1228_v42, 4 }
 0x384   : > { %v1239_v22 = vmax.f32 %v1237_v23, %v1238_v3  ;;  %v1230_v33 = vmax.f32 %v1228_v42, %v1229_v13  ;;  %v1307_v23 = vrot.slane %v1306_v11, 2 }
 0x386   : > { %v1240_v45 = vrot.slane %v1239_v22, 1  ;;  %v1231_v62 = vrot.slane %v1230_v33, 2 }
 0x387   : > { %v4730_v2 = vpop.eup %4006  ;;  %v4738_v42 = vpop.xlane.xlu1 %1189 }
 0x388   : > { %v4732_v12 = vpop.eup %4008  ;;  %v1241_v49 = vmax.f32 %v1239_v22, %v1240_v45  ;;  %v1232_v27 = vmax.f32 %v1230_v33, %v1231_v62  ;;  %v1314_v22 = vrot.slane %v1313_v56, 2  ;;  %v1308_v45 = vadd.f32 %v1307_v23, %v1306_v11 }
 0x389   : > { %v1325_v21 = vadd.f32 %v4732_v12, %v4730_v2 }
 0x38a   : > { %v1266_v25 = vsub.f32 %v1184_v44, %v1241_v49  ;;  %v1267_v40 = vsub.f32 %v1187_v46, %v1241_v49  ;;  %v1233_v41 = vrot.slane %v1232_v27, 1  ;;  %v1309_v60 = vrot.slane %v1308_v45, 1 }
 0x38b   : > { %v4736_v29 = vpop.eup %4010  ;;  %v1193_v30 = vpop.xlane.xlu0 %1192  ;;  %v1326_v33 = vrot.slane %v1325_v21, 4 }
 0x38c   : > { %v4740_v3 = vpop.eup %4012  ;;  %v1292_v13 = vmul.f32 1.442695, %v1266_v25  ;;  %v1294_v38 = vmul.f32 1.442695, %v1267_v40  ;;  %v1234_v24 = vmax.f32 %v1232_v27, %v1233_v41  ;;  %v1242_v44 = vmax.f32 %v4738_v42, %v1193_v30  ;;  %v1196_v8 = vpop.xlane.xlu1 %1195 }
 0x38d   : > { %v1318_v35 = vadd.f32 %v4740_v3, %v4736_v29  ;;  %v1315_v40 = vadd.f32 %v1314_v22, %v1313_v56  ;;  %v1327_v41 = vadd.f32 %v1326_v33, %v1325_v21 }
 0x38e   : > { %4014 = vpow2.f32 %v1292_v13  ;;  %v1264_v46 = vsub.f32 %v1178_v16, %v1234_v24  ;;  %v1265_v32 = vsub.f32 %v1181_v43, %v1234_v24  ;;  %v1243_v49 = vrot.slane %v1242_v44, 4 }
 0x38f   : > { %v1319_v62 = vrot.slane %v1318_v35, 4  ;;  %4016 = vpow2.f32 %v1294_v38  ;;  %v4745_v25 = vpop.xlane.xlu0 %1198  ;;  %v1316_v11 = vrot.slane %v1315_v40, 1  ;;  %v1328_v23 = vrot.slane %v1327_v41, 2 }
 0x390   : > { %v1288_v19 = vmul.f32 1.442695, %v1264_v46  ;;  %v1290_v18 = vmul.f32 1.442695, %v1265_v32  ;;  %v1244_v7 = vmax.f32 %v1242_v44, %v1243_v49  ;;  %v1249_v61 = vmax.f32 %v1196_v8, %v4745_v25 }
 0x391   : > { %v1320_v27 = vadd.f32 %v1319_v62, %v1318_v35  ;;  %v1310_v32 = vadd.f32 %v1309_v60, %v1308_v45  ;;  %v1317_v33 = vadd.f32 %v1316_v11, %v1315_v40  ;;  %v1329_v35 = vadd.f32 %v1328_v23, %v1327_v41 }
 0x392   : > { %4018 = vpow2.f32 %v1288_v19  ;;  %v1245_v16 = vrot.slane %v1244_v7, 2  ;;  %v1250_v38 = vrot.slane %v1249_v61, 4 }
 0x393   : > { %v1321_v13 = vrot.slane %v1320_v27, 2  ;;  %4020 = vpow2.f32 %v1290_v18  ;;  %v1727_v43 = vpop.xlane.xlu0 %1726  ;;  %v1330_v41 = vrot.slane %v1329_v35, 1 }
 0x394   : > { %v1246_v46 = vmax.f32 %v1244_v7, %v1245_v16  ;;  %v1251_v51 = vmax.f32 %v1249_v61, %v1250_v38  ;;  %v1729_v56 = vmul.f32 0.0009765625, %v1727_v43  ;;  %4022 = vrcp.f32 %v1310_v32 }
 0x395   : > { %v1322_v24 = vadd.f32 %v1321_v13, %v1320_v27  ;;  %4024 = vrcp.f32 %v1317_v33 }
 0x396   : > { %v1247_v22 = vrot.slane %v1246_v46, 1  ;;  %v1252_v44 = vrot.slane %v1251_v51, 2  ;;  %v4755_v7 = vsub.f32 %v4649_v52, %v1729_v56  ;;  %v4761_v40 = vsub.f32 %v4652_v0, %v1729_v56 }
 0x397   : > { %v1323_v62 = vrot.slane %v1322_v24, 1 }
 0x398   : > { %v4748_v21 = vpop.eup %4014  ;;  %v1248_v49 = vmax.f32 %v1246_v46, %v1247_v22  ;;  %v1253_v50 = vmax.f32 %v1251_v51, %v1252_v44  ;;  %v4768_v46 = vsub.f32 %v4660_v20, %v1729_v56  ;;  %v4779_v44 = vsub.f32 %v4674_v36, %v1729_v56 }
 0x399   : > { %v4750_v19 = vpop.eup %4016  ;;  %v1324_v43 = vadd.f32 %v1323_v62, %v1322_v24  ;;  %v1739_v24 = vmul.f32 %v4761_v40, %v4761_v40  ;;  %v4789_v36 = vsub.f32 %v4687_v63, %v1729_v56 }
 0x39a   : > { %v1339_v18 = vadd.f32 %v4750_v19, %v4748_v21  ;;  %v1268_v45 = vsub.f32 %v4738_v42, %v1248_v49  ;;  %v1269_v27 = vsub.f32 %v1193_v30, %v1248_v49  ;;  %v1254_v13 = vrot.slane %v1253_v50, 1 }
 0x39b   : > { %v4771_v30 = vsub.f32 %v4668_v31, %v1729_v56  ;;  %v1738_v42 = vmul.f32 %v4755_v7, %v4755_v7  ;;  %v1740_v49 = vmul.f32 %v4768_v46, %v4768_v46 }
 0x39c   : > { %v4757_v60 = vpop.eup %4018  ;;  %v1340_v61 = vrot.slane %v1339_v18, 4  ;;  %v1296_v51 = vmul.f32 1.442695, %v1268_v45  ;;  %v1298_v23 = vmul.f32 1.442695, %v1269_v27  ;;  %v1255_v38 = vmax.f32 %v1253_v50, %v1254_v13 }
 0x39d   : > { %v4763_v16 = vpop.eup %4020  ;;  %v1331_v50 = vadd.f32 %v1330_v41, %v1329_v35  ;;  %v4784_v45 = vsub.f32 %v4680_v14, %v1729_v56  ;;  %v1746_v35 = vadd.f32 %v1739_v24, %v1738_v42  ;;  %v1744_v24 = vmul.f32 %v4789_v36, %v4789_v36 }
 0x39e   : > { %v1341_v11 = vadd.f32 %v1340_v61, %v1339_v18  ;;  %v1332_v52 = vadd.f32 %v4763_v16, %v4757_v60  ;;  %4026 = vpow2.f32 %v1296_v51  ;;  %v1270_v22 = vsub.f32 %v1196_v8, %v1255_v38  ;;  %v4023_v27 = vpop.eup %4022 }
 0x39f   : > { %4028 = vpow2.f32 %v1298_v23  ;;  %v1271_v33 = vsub.f32 %v4745_v25, %v1255_v38  ;;  %v1741_v25 = vmul.f32 %v4771_v30, %v4771_v30  ;;  %v4025_v41 = vpop.eup %4024  ;;  %v4794_v23 = vsub.f32 %v4693_v34, %v1729_v56 }
 0x3a0   : > { %v1342_v0 = vrot.slane %v1341_v11, 2  ;;  %v1333_v32 = vrot.slane %v1332_v52, 4  ;;  %4030 = vrcp.f32 %v1324_v43  ;;  %v1300_v62 = vmul.f32 1.442695, %v1270_v22 }
 0x3a1   : > { %v1302_v18 = vmul.f32 1.442695, %v1271_v33  ;;  %v1742_v43 = vmul.f32 %v4779_v44, %v4779_v44  ;;  %v1368_v33 = vmul.f32 %v4023_v27, %v4718_v54  ;;  %v1369_v56 = vmul.f32 %v4023_v27, %v4720_v1 }
 0x3a2   : > { %v1343_v20 = vadd.f32 %v1342_v0, %v1341_v11  ;;  %v1334_v31 = vadd.f32 %v1333_v32, %v1332_v52  ;;  %4032 = vpow2.f32 %v1300_v62  ;;  %v1747_v11 = vadd.f32 %v1746_v35, %v1740_v49 }
 0x3a3   : > { %4034 = vrcp.f32 %v1331_v50  ;;  %v1743_v52 = vmul.f32 %v4784_v45, %v4784_v45  ;;  %v1745_v50 = vmul.f32 %v4794_v23, %v4794_v23  ;;  %v1371_v62 = vmul.f32 %v4025_v41, %v4724_v9 }
 0x3a4   : > { %v1344_v61 = vrot.slane %v1343_v20, 1  ;;  %v1335_v8 = vrot.slane %v1334_v31, 2  ;;  %4036 = vpow2.f32 %v1302_v18  ;;  %v1748_v38 = vadd.f32 %v1747_v11, %v1741_v25 }
 0x3a5   : > { %v5336_v27 = vmax.f32 %v4428_v47, 0.0  ;;  %v5338_v9 = vmax.f32 %v4440_v57, 0.0  ;;  %v5340_v47 = vmax.f32 %v4452_v4, 0.0 }
 0x3a6   : > { %v1336_v13 = vadd.f32 %v1335_v8, %v1334_v31  ;;  %v1345_v14 = vadd.f32 %v1344_v61, %v1343_v20  ;;  %v1749_v32 = vadd.f32 %v1748_v38, %v1742_v43  ;;  %v1370_v31 = vmul.f32 %v4025_v41, %v4722_v58 }
 0x3a7   : > { %v5337_v43 = vmax.f32 %v4431_v48, 0.0  ;;  %v5341_v48 = vmax.f32 %v4455_v6, 0.0 }
 0x3a8   : > { %v1337_v51 = vrot.slane %v1336_v13, 1  ;;  %v4798_v0 = vpop.eup %4026  ;;  %4038 = vrcp.f32 %v1345_v14  ;;  %v1750_v20 = vadd.f32 %v1749_v32, %v1743_v52  ;;  %v1386_v41 = vmul.f32 %v1370_v31, %v5338_v9 }
 0x3a9   : > { %v4800_v63 = vpop.eup %4028  ;;  %v1385_v58 = vmul.f32 %v1369_v56, %v5337_v43  ;;  %v5339_v14 = vmax.f32 %v4443_v59, 0.0  ;;  %v5346_v9 = vmax.f32 %v4491_v39, 0.0 }
 0x3aa   : > { %v1338_v42 = vadd.f32 %v1337_v51, %v1336_v13  ;;  %v4031_v22 = vpop.eup %4030  ;;  %v1346_v34 = vadd.f32 %v4800_v63, %v4798_v0  ;;  %v1751_v8 = vadd.f32 %v1750_v20, %v1744_v24  ;;  %v1384_v13 = vmul.f32 %v1368_v33, %v5336_v27 }
 0x3ab   : > { %v1372_v54 = vmul.f32 %v4031_v22, %v4736_v29  ;;  %v1373_v61 = vmul.f32 %v4031_v22, %v4740_v3  ;;  %v1387_v29 = vmul.f32 %v1371_v62, %v5339_v14  ;;  %v5342_v20 = vmax.f32 %v4464_v15, 0.0 }
 0x3ac   : > { %4040 = vrcp.f32 %v1338_v42  ;;  %v1347_v18 = vrot.slane %v1346_v34, 4  ;;  %v4812_v49 = vpop.eup %4032  ;;  %v1752_v11 = vadd.f32 %v1751_v8, %v1745_v50  ;;  %v1400_v59 = vadd.f32 %v1385_v58, %v1384_v13 }
 0x3ad   : > { %v4035_v25 = vpop.eup %4034  ;;  %v1388_v42 = vmul.f32 %v1372_v54, %v5340_v47  ;;  %v1389_v24 = vmul.f32 %v1373_v61, %v5341_v48  ;;  %v1407_v50 = vadd.f32 %v1387_v29, %v1386_v41  ;;  %v5345_v27 = vmax.f32 %v4476_v26, 0.0 }
 0x3ae   : > { %v1348_v35 = vadd.f32 %v1347_v18, %v1346_v34  ;;  %v4816_v1 = vpop.eup %4036  ;;  %v1374_v52 = vmul.f32 %v4035_v25, %v4730_v2  ;;  %v1375_v38 = vmul.f32 %v4035_v25, %v4732_v12  ;;  %1753 = vadd.xlane.f32.xlu0 %v1752_v11  ;;  %v5343_v12 = vmax.f32 %v4467_v17, 0.0 }
 0x3af   : > { %v1353_v3 = vadd.f32 %v4816_v1, %v4812_v49  ;;  %v1414_v4 = vadd.f32 %v1389_v24, %v1388_v42  ;;  %v5344_v25 = vmax.f32 %v4479_v28, 0.0  ;;  %v1401_v13 = vrot.slane %v1400_v59, 4 }
 0x3b0   : > { %v1349_v51 = vrot.slane %v1348_v35, 2  ;;  %v1390_v2 = vmul.f32 %v1374_v52, %v5342_v20  ;;  %v1391_v31 = vmul.f32 %v1375_v38, %v5343_v12  ;;  %v1408_v43 = vrot.slane %v1407_v50, 4 }
 0x3b1   : > { %v1354_v32 = vrot.slane %v1353_v3, 4  ;;  %v1402_v28 = vadd.f32 %v1401_v13, %v1400_v59  ;;  %v3774_v59 = vld [vmem:[%s5304_s5 + $0x60] sm:$0xff]  }
 0x3b2   : > { %v1350_v57 = vadd.f32 %v1349_v51, %v1348_v35  ;;  %v4039_v22 = vpop.eup %4038  ;;  %v1421_v58 = vadd.f32 %v1391_v31, %v1390_v2  ;;  %v1409_v29 = vadd.f32 %v1408_v43, %v1407_v50 }
 0x3b3   : > { %v1355_v34 = vadd.f32 %v1354_v32, %v1353_v3  ;;  %v1378_v61 = vmul.f32 %v4039_v22, %v4748_v21  ;;  %v1379_v8 = vmul.f32 %v4039_v22, %v4750_v19  ;;  %v5347_v21 = vmax.f32 %v4488_v37, 0.0  ;;  %v3773_v22 = vld [vmem:[%s5304_s5 + $0x18] sm:$0xff]  }
 0x3b4   : > { %v1351_v33 = vrot.slane %v1350_v57, 1  ;;  %v1422_v51 = vrot.slane %v1421_v58, 4  ;;  %v1410_v38 = vrot.slane %v1409_v29, 2  ;;  %v1403_v42 = vrot.slane %v1402_v28, 2  ;;  %3467 = vmatpush3.bf16.msra.mxu0 %v3773_v22 }
 0x3b5   : > { %v1356_v54 = vrot.slane %v1355_v34, 2  ;;  %v1395_v41 = vmul.f32 %v1379_v8, %v5346_v9  ;;  %v1394_v19 = vmul.f32 %v1378_v61, %v5347_v21  ;;  %3468 = vmatprep.subr.bf16.mxu0 %v3774_v59  ;;  %v3776_v59 = vld [vmem:[%s5304_s5 + $0x68] sm:$0xff]  }
 0x3b6   : > { %v4041_v56 = vpop.eup %4040  ;;  %v1352_v18 = vadd.f32 %v1351_v33, %v1350_v57  ;;  %v1423_v24 = vadd.f32 %v1422_v51, %v1421_v58  ;;  %v5348_v33 = vmax.f32 %v4500_v53, 0.0  ;;  %v1411_v20 = vadd.f32 %v1410_v38, %v1409_v29 }
 0x3b7   : > { %v1376_v62 = vmul.f32 %v4041_v56, %v4757_v60  ;;  %v1377_v6 = vmul.f32 %v4041_v56, %v4763_v16  ;;  %v1357_v15 = vadd.f32 %v1356_v54, %v1355_v34  ;;  %v1415_v60 = vrot.slane %v1414_v4, 4 }
 0x3b8   : > { %4042 = vrcp.f32 %v1352_v18  ;;  %v1435_v52 = vadd.f32 %v1395_v41, %v1394_v19  ;;  %v5349_v56 = vmax.f32 %v4503_v55, 0.0  ;;  %v1424_v12 = vrot.slane %v1423_v24, 2 }
 0x3b9   : > { %v1393_v35 = vmul.f32 %v1377_v6, %v5344_v25  ;;  %v1392_v17 = vmul.f32 %v1376_v62, %v5345_v27  ;;  %v1358_v11 = vrot.slane %v1357_v15, 1  ;;  %v1416_v3 = vadd.f32 %v1415_v60, %v1414_v4 }
 0x3ba   : > { %v1436_v37 = vrot.slane %v1435_v52, 4  ;;  %v1412_v55 = vrot.slane %v1411_v20, 1  ;;  %v1425_v25 = vadd.f32 %v1424_v12, %v1423_v24 }
 0x3bb   : > { %v1428_v16 = vadd.f32 %v1393_v35, %v1392_v17  ;;  %v1359_v14 = vadd.f32 %v1358_v11, %v1357_v15  ;;  %v1417_v48 = vrot.slane %v1416_v3, 2  ;;  %v5350_v15 = vmax.f32 %v4512_v5, 0.0 }
 0x3bc   : > { %v1437_v4 = vadd.f32 %v1436_v37, %v1435_v52  ;;  %v5351_v17 = vmax.f32 %v4515_v10, 0.0  ;;  %v4871_v60 = vadd.f32 %v1412_v55, %v1411_v20  ;;  %v1426_v41 = vrot.slane %v1425_v25, 1  ;;  %v3781_v20 = vld [vmem:[%s5304_s5 + $0x38] sm:$0xff]   ;;  %v3783_v55 = vld [vmem:[%s5304_s5 + $0x100] sm:$0xff]  }
 0x3bd   : > { %4044 = vrcp.f32 %v1359_v14  ;;  %v1429_v26 = vrot.slane %v1428_v16, 4  ;;  %v1418_v2 = vadd.f32 %v1417_v48, %v1416_v3 }
 0x3be   : > { %v1438_v43 = vrot.slane %v1437_v4, 2  ;;  %v4884_v3 = vadd.f32 %v1426_v41, %v1425_v25  ;;  %v3789_v25 = vld [vmem:[%s5304_s5 + $0x118] sm:$0xff]  }
 0x3bf   : > { %v1430_v57 = vadd.f32 %v1429_v26, %v1428_v16  ;;  %v1419_v8 = vrot.slane %v1418_v2, 1 }
 0x3c0   : > { %v1439_v21 = vadd.f32 %v1438_v43, %v1437_v4  ;;  %v3795_v43 = vld [vmem:[%s5304_s5 + $0x130] sm:$0xff]  }
 0x3c1   : > { %v1431_v31 = vrot.slane %v1430_v57, 2  ;;  %v4875_v16 = vadd.f32 %v1419_v8, %v1418_v2  ;;  %v3788_v8 = vld [vmem:[%s5304_s5 + $0x158] sm:$0xff]  }
 0x3c2   : > { %v4043_v47 = vpop.eup %4042  ;;  %v1440_v26 = vrot.slane %v1439_v21, 1 }
 0x3c3   : > { %v1381_v39 = vmul.f32 %v4043_v47, %v4800_v63  ;;  %v1380_v32 = vmul.f32 %v4043_v47, %v4798_v0  ;;  %v3775_v0 = vld [vmem:[%s5304_s5 + $0x20] sm:$0xff]   ;;  %v1404_v63 = vadd.f32 %v1403_v42, %v1402_v28  ;;  %v1432_v35 = vadd.f32 %v1431_v31, %v1430_v57 }
 0x3c4   : > { %3469 = vmatpush3.bf16.msra.mxu0 %v3775_v0  ;;  %v4892_v24 = vadd.f32 %v1440_v26, %v1439_v21  ;;  %v3782_v0 = vld [vmem:[%s5304_s5 + $0x140] sm:$0xff]  }
 0x3c5   : > { %v1396_v34 = vmul.f32 %v1380_v32, %v5348_v33  ;;  %v1397_v50 = vmul.f32 %v1381_v39, %v5349_v56  ;;  %v1405_v61 = vrot.slane %v1404_v63, 1  ;;  %v1433_v9 = vrot.slane %v1432_v35, 1  ;;  %v3777_v33 = vld [vmem:[%s5304_s5 + $0x28] sm:$0xff]   ;;  %3470 = vmatprep.subr.bf16.mxu0 %v3776_v59  ;;  %v3779_v56 = vld [vmem:[%s5304_s5 + $0x30] sm:$0xff]  }
 0x3c7   : > { %v1442_v62 = vadd.f32 %v1397_v50, %v1396_v34  ;;  %v4045_v6 = vpop.eup %4044  ;;  %v4880_v28 = vadd.f32 %v1433_v9, %v1432_v35  ;;  %v3778_v34 = vld [vmem:[%s5304_s5 + $0x70] sm:$0xff]   ;;  %v3780_v50 = vld [vmem:[%s5304_s5 + $0x78] sm:$0xff]   ;;  %v3790_v35 = vld [vmem:[%s5304_s5 + $0x160] sm:$0xff]  }
 0x3c8   : > { %v1383_v53 = vmul.f32 %v4045_v6, %v4816_v1  ;;  %v1382_v18 = vmul.f32 %v4045_v6, %v4812_v49  ;;  %v4873_v49 = vadd.f32 %v1405_v61, %v1404_v63  ;;  %3471 = vmatpush3.bf16.msra.mxu0 %v3777_v33  ;;  %v3784_v61 = vld [vmem:[%s5304_s5 + $0x148] sm:$0xff]  }
 0x3c9   : > { %v1443_v54 = vrot.slane %v1442_v62, 4  ;;  %3472 = vmatprep.subr.bf16.mxu0 %v3778_v34 }
 0x3ca   : > { %v1398_v27 = vmul.f32 %v1382_v18, %v5350_v15  ;;  %v1399_v13 = vmul.f32 %v1383_v53, %v5351_v17  ;;  %v1465_v10 = vsel %vm1464_vm1, %v4871_v60, %v4873_v49  ;;  %v3791_v15 = vld [vmem:[%s5304_s5 + $0x120] sm:$0xff]   ;;  %v3793_v17 = vld [vmem:[%s5304_s5 + $0x128] sm:$0xff]  }
 0x3cb   : > { %v1444_v58 = vadd.f32 %v1443_v54, %v1442_v62  ;;  %v1467_v51 = vsel %vm1466_vm2, %v4875_v16, %v1465_v10 }
 0x3cc   : > { %v1449_v11 = vadd.f32 %v1399_v13, %v1398_v27  ;;  %v1469_v47 = vsel %vm1468_vm3, %v4884_v3, %v1467_v51  ;;  %3473 = vmatpush3.bf16.msra.mxu0 %v3779_v56  ;;  %v3792_v27 = vld [vmem:[%s5304_s5 + $0x168] sm:$0xff]   ;;  %v3794_v13 = vld [vmem:[%s5304_s5 + $0x170] sm:$0xff]  }
 0x3cd   : > { %v1445_v1 = vrot.slane %v1444_v58, 2  ;;  %v1471_v48 = vsel %vm1470_vm4, %v4880_v28, %v1469_v47  ;;  %3474 = vmatprep.subr.bf16.mxu0 %v3780_v50 }
 0x3ce   : > { %v1450_v19 = vrot.slane %v1449_v11, 4  ;;  %v1473_v32 = vsel %vm1472_vm5, %v4892_v24, %v1471_v48 }
 0x3cf   : > { %v1446_v5 = vadd.f32 %v1445_v1, %v1444_v58  ;;  %v3796_v1 = vld [vmem:[%s5304_s5 + $0x178] sm:$0xff]  }
 0x3d0   : > { %v1451_v14 = vadd.f32 %v1450_v19, %v1449_v11  ;;  %3475 = vmatpush3.bf16.msra.mxu0 %v3781_v20 }
 0x3d1   : > { %v1447_v29 = vrot.slane %v1446_v5, 1  ;;  %3504 = vmatprep.subr.bf16.mxu0 %v3782_v0 }
 0x3d2   : > { %v1452_v52 = vrot.slane %v1451_v14, 2 }
 0x3d3   : > { %v4888_v42 = vadd.f32 %v1447_v29, %v1446_v5 }
 0x3d4   : > { %v1453_v38 = vadd.f32 %v1452_v52, %v1451_v14  ;;  %v3797_v14 = vld [vmem:[%s5304_s5 + $0x138] sm:$0xff]  }
 0x3d5   : > { %v1475_v37 = vsel %vm1474_vm6, %v4888_v42, %v1473_v32 }
 0x3d6   : > { %v1454_v57 = vrot.slane %v1453_v38, 1 }
 0x3d8   : > { %v4894_v39 = vadd.f32 %v1454_v57, %v1453_v38 }
 0x3da   : > { %v1477_v22 = vsel %vm1476_vm7, %v4894_v39, %v1475_v37 }
 0x3db   : > { %1479 = vadd.xlane.f32.xlu1 %v1477_v22 }
 0x43b   : > { %v1754_v63 = vpop.xlane.xlu0 %1753 }
 0x43c   : > { %v1755_v2 = vmul.f32 0.0009765625, %v1754_v63 }
 0x43e   : > { %v1756_v12 = vadd.f32 1e-05, %v1755_v2 }
 0x440   : > { %4046 = vrsqrt.f32 %v1756_v12 }
 0x44a   : > { %v4923_v31 = vpop.eup %4046 }
 0x44b   : > { %v1759_v4 = vmul.f32 %v4923_v31, %v4761_v40  ;;  %v1758_v62 = vmul.f32 %v4923_v31, %v4755_v7  ;;  %v1763_v6 = vmul.f32 %v4923_v31, %v4784_v45  ;;  %v3785_v7 = vld [vmem:[%s5304_s5 + $0x108] sm:$0xff]   ;;  %v3786_v40 = vld [vmem:[%s5304_s5 + $0x150] sm:$0xff]   ;;  %v1762_v9 = vmul.f32 %v4923_v31, %v4779_v44 }
 0x44c   : > { %v3787_v45 = vld [vmem:[%s5304_s5 + $0x110] sm:$0xff]  }
 0x44d   : > { %v1767_v53 = vpack.c.bf16 %v1759_v4, %v1759_v4  ;;  %v1766_v18 = vpack.c.bf16 %v1758_v62, %v1758_v62  ;;  %v1771_v54 = vpack.c.bf16 %v1763_v6, %v1763_v6 }
 0x44f   : > { %2318 = vmatprep.mubr.bf16.mxu0 %v1767_v53  ;;  %v3798_v53 = vld [vmem:[#allocation2] sm:$0xff]  }
 0x450   : > { %2319 = vmatmul.mubr.bf16.vlgmr.msra.gmra.mrb[32].mxu0 %v1766_v18  ;;  %v4166_v18 = vmov 0.0  }
 0x451   : > { %3505 = vmatpush3.bf16.msra.mxu0 %v3783_v55  ;;  %2398 = vmatprep.mubr.bf16.mxu0 %v1771_v54  ;;  %v3799_v55 = vld [vmem:[#allocation2 + $0x8] sm:$0xff]   ;;  %v3800_v54 = vld [vmem:[#allocation2 + $0x10] sm:$0xff]  }
 0x452   : > { %3506 = vmatprep.subr.bf16.mxu0 %v3784_v61  ;;  %3633 = vmatprep.subr.bf16.mxu1 %v4166_v18  ;;  %v3801_v61 = vld [vmem:[#allocation2 + $0x18] sm:$0xff]  }
 0x453   : > { %3634 = vmatpush3.bf16.msra.mxu1 %v3798_v53  ;;  %3649 = vmatprep.mubr.msk.bf16.mxu1 %vm4167_vm8, %v4166_v18 }
 0x454   : > { %3635 = vmatprep.subr.bf16.mxu1 %v4166_v18 }
 0x455   : > { %3507 = vmatpush3.bf16.msra.mxu0 %v3785_v7  ;;  %v3802_v7 = vld [vmem:[#allocation2 + $0x20] sm:$0xff]  }
 0x456   : > { %3508 = vmatprep.subr.bf16.mxu0 %v3786_v40  ;;  %v3803_v40 = vld [vmem:[#allocation2 + $0x28] sm:$0xff]  }
 0x457   : > { %3636 = vmatpush3.bf16.msra.mxu1 %v3799_v55 }
 0x458   : > { %3637 = vmatprep.subr.bf16.mxu1 %v4166_v18 }
 0x459   : > { %3509 = vmatpush3.bf16.msra.mxu0 %v3787_v45  ;;  %v3804_v45 = vld [vmem:[#allocation2 + $0x30] sm:$0xff]  }
 0x45a   : > { %3510 = vmatprep.subr.bf16.mxu0 %v3788_v8  ;;  %v3805_v8 = vld [vmem:[#allocation2 + $0x38] sm:$0xff]  }
 0x45b   : > { %3638 = vmatpush3.bf16.msra.mxu1 %v3800_v54 }
 0x45c   : > { %3639 = vmatprep.subr.bf16.mxu1 %v4166_v18 }
 0x45d   : > { %3511 = vmatpush3.bf16.msra.mxu0 %v3789_v25  ;;  %v3806_v25 = vld [vmem:[%s5304_s5 + $0xc0] sm:$0xff]  }
 0x45e   : > { %3512 = vmatprep.subr.bf16.mxu0 %v3790_v35 }
 0x45f   : > { %3640 = vmatpush3.bf16.msra.mxu1 %v3801_v61  ;;  %v3807_v61 = vld [vmem:[%s5304_s5 + $0x80] sm:$0xff]  }
 0x460   : > { %3641 = vmatprep.subr.bf16.mxu1 %v4166_v18 }
 0x461   : > { %3513 = vmatpush3.bf16.msra.mxu0 %v3791_v15 }
 0x462   : > { %3514 = vmatprep.subr.bf16.mxu0 %v3792_v27 }
 0x463   : > { %3642 = vmatpush3.bf16.msra.mxu1 %v3802_v7 }
 0x464   : > { %3643 = vmatprep.subr.bf16.mxu1 %v4166_v18 }
 0x465   : > { %3515 = vmatpush3.bf16.msra.mxu0 %v3793_v17 }
 0x466   : > { %3516 = vmatprep.subr.bf16.mxu0 %v3794_v13 }
 0x467   : > { %3644 = vmatpush3.bf16.msra.mxu1 %v3803_v40 }
 0x468   : > { %v1480_v58 = vpop.xlane.xlu1 %1479  ;;  %3645 = vmatprep.subr.bf16.mxu1 %v4166_v18 }
 0x469   : > { %v1482_v11 = vmul.f32 0.0078125, %v1480_v58  ;;  %3517 = vmatpush3.bf16.msra.mxu0 %v3795_v43 }
 0x46a   : > { %3518 = vmatprep.subr.bf16.mxu0 %v3796_v1 }
 0x46b   : > { %v1484_v41 = vrot.slane %v1482_v11, 1  ;;  %v1485_v21 = vrot.slane %v1482_v11, 2  ;;  %v1486_v5 = vrot.slane %v1482_v11, 3  ;;  %v1487_v19 = vrot.slane %v1482_v11, 4  ;;  %3646 = vmatpush3.bf16.msra.mxu1 %v3804_v45 }
 0x46c   : > { %v1488_v10 = vrot.slane %v1482_v11, 5  ;;  %v1489_v29 = vrot.slane %v1482_v11, 6  ;;  %v1490_v51 = vrot.slane %v1482_v11, 7  ;;  %v4979_v26 = vsub.f32 %v4873_v49, %v1482_v11  ;;  %3647 = vmatprep.subr.bf16.mxu1 %v4166_v18 }
 0x46d   : > { %v4982_v52 = vsub.f32 %v4871_v60, %v1484_v41  ;;  %v4985_v44 = vsub.f32 %v4875_v16, %v1485_v21  ;;  %v4988_v38 = vsub.f32 %v4884_v3, %v1486_v5  ;;  %v4991_v47 = vsub.f32 %v4880_v28, %v1487_v19  ;;  %3519 = vmatpush3.bf16.msra.mxu0 %v3797_v14 }
 0x46e   : > { %v4994_v48 = vsub.f32 %v4892_v24, %v1488_v10  ;;  %v4997_v57 = vsub.f32 %v4888_v42, %v1489_v29  ;;  %v1770_v49 = vpack.c.bf16 %v1762_v9, %v1762_v9  ;;  %v5000_v32 = vsub.f32 %v4894_v39, %v1490_v51 }
 0x46f   : > { %v1508_v60 = vmul.f32 %v4982_v52, %v4982_v52  ;;  %v1509_v16 = vmul.f32 %v4985_v44, %v4985_v44  ;;  %v1510_v28 = vmul.f32 %v4988_v38, %v4988_v38  ;;  %v1511_v3 = vmul.f32 %v4991_v47, %v4991_v47  ;;  %3648 = vmatpush3.bf16.msra.mxu1 %v3805_v8  ;;  %v3808_v8 = vld [vmem:[%s5304_s5 + $0xc8] sm:$0xff]  }
 0x470   : > { %v1507_v42 = vmul.f32 %v4979_v26, %v4979_v26  ;;  %v1512_v24 = vmul.f32 %v4994_v48, %v4994_v48  ;;  %v1513_v22 = vmul.f32 %v4997_v57, %v4997_v57  ;;  %2399 = vmatmul.mubr.bf16.vlgmr.msra.gmra.mrb[36].mxu0 %v1770_v49  ;;  %v1514_v59 = vmul.f32 %v5000_v32, %v5000_v32 }
 0x471   : > { %v1523_v39 = vrot.slane %v1508_v60, 7  ;;  %v1525_v37 = vrot.slane %v1509_v16, 6  ;;  %v1527_v34 = vrot.slane %v1510_v28, 5  ;;  %v1529_v50 = vrot.slane %v1511_v3, 4  ;;  %3482 = vmatprep.subr.bf16.mxu1 %v3806_v25 }
 0x472   : > { %v1531_v0 = vrot.slane %v1512_v24, 3  ;;  %v1533_v2 = vrot.slane %v1513_v22, 2  ;;  %v1535_v4 = vrot.slane %v1514_v59, 1 }
 0x473   : > { %v1524_v33 = vsel %vm1464_vm1, %v1523_v39, %v1507_v42 }
 0x474   : > { %v1526_v56 = vsel %vm1466_vm2, %v1525_v37, %v1524_v33 }
 0x475   : > { %v1528_v20 = vsel %vm1468_vm3, %v1527_v34, %v1526_v56 }
 0x476   : > { %v1530_v63 = vsel %vm1470_vm4, %v1529_v50, %v1528_v20 }
 0x477   : > { %v1532_v12 = vsel %vm1472_vm5, %v1531_v0, %v1530_v63 }
 0x478   : > { %v1534_v62 = vsel %vm1474_vm6, %v1533_v2, %v1532_v12 }
 0x479   : > { %v1536_v6 = vsel %vm1476_vm7, %v1535_v4, %v1534_v62  ;;  %v1761_v62 = vmul.f32 %v4923_v31, %v4771_v30 }
 0x47a   : > { %1538 = vadd.xlane.f32.xlu1 %v1536_v6 }
 0x47b   : > { %v1769_v30 = vpack.c.bf16 %v1761_v62, %v1761_v62 }
 0x507   : > { %v1539_v35 = vpop.xlane.xlu1 %1538 }
 0x508   : > { %v1540_v15 = vmul.f32 0.0078125, %v1539_v35  ;;  %v3809_v35 = vld [vmem:[%s5304_s5 + $0x88] sm:$0xff]  }
 0x50a   : > { %v1541_v27 = vadd.f32 1e-05, %v1540_v15  ;;  %v3810_v15 = vld [vmem:[%s5304_s5 + $0xd0] sm:$0xff]  }
 0x50c   : > { %4048 = vrsqrt.f32 %v1541_v27  ;;  %v3811_v27 = vld [vmem:[%s5304_s5 + $0x90] sm:$0xff]  }
 0x516   : > { %v4049_v17 = vpop.eup %4048 }
 0x517   : > { %v1544_v13 = vrot.slane %v4049_v17, 1  ;;  %v1545_v43 = vrot.slane %v4049_v17, 2  ;;  %v1546_v58 = vrot.slane %v4049_v17, 3  ;;  %v1547_v1 = vrot.slane %v4049_v17, 4 }
 0x518   : > { %v1548_v11 = vrot.slane %v4049_v17, 5  ;;  %v1549_v9 = vrot.slane %v4049_v17, 6  ;;  %v1550_v41 = vrot.slane %v4049_v17, 7  ;;  %v1559_v21 = vmul.f32 %v4049_v17, %v4979_v26  ;;  %v3812_v17 = vld [vmem:[%s5304_s5 + $0xd8] sm:$0xff]  }
 0x519   : > { %v1560_v5 = vmul.f32 %v1544_v13, %v4982_v52  ;;  %v1561_v19 = vmul.f32 %v1545_v43, %v4985_v44  ;;  %v1562_v14 = vmul.f32 %v1546_v58, %v4988_v38  ;;  %v1563_v10 = vmul.f32 %v1547_v1, %v4991_v47  ;;  %v3813_v13 = vld [vmem:[%s5304_s5 + $0x98] sm:$0xff]   ;;  %v3814_v43 = vld [vmem:[%s5304_s5 + $0xe0] sm:$0xff]   ;;  %v3816_v1 = vld [vmem:[%s5304_s5 + $0xe8] sm:$0xff]  }
 0x51a   : > { %v1564_v29 = vmul.f32 %v1548_v11, %v4994_v48  ;;  %v1565_v51 = vmul.f32 %v1549_v9, %v4997_v57  ;;  %v1566_v49 = vmul.f32 %v1550_v41, %v5000_v32  ;;  %v1567_v60 = vpack.c.bf16 %v1559_v21, %v1559_v21  ;;  %v3815_v58 = vld [vmem:[%s5304_s5 + $0xa0] sm:$0xff]   ;;  %v3817_v11 = vld [vmem:[%s5304_s5 + $0xa8] sm:$0xff]   ;;  %v3818_v9 = vld [vmem:[%s5304_s5 + $0xf0] sm:$0xff]  }
 0x51b   : > { %v1568_v16 = vpack.c.bf16 %v1560_v5, %v1560_v5  ;;  %v1569_v28 = vpack.c.bf16 %v1561_v19, %v1561_v19  ;;  %v1570_v3 = vpack.c.bf16 %v1562_v14, %v1562_v14  ;;  %v1571_v42 = vpack.c.bf16 %v1563_v10, %v1563_v10  ;;  %v3819_v41 = vld [vmem:[%s5304_s5 + $0xb0] sm:$0xff]   ;;  %v3820_v21 = vld [vmem:[%s5304_s5 + $0xf8] sm:$0xff]   ;;  %v3822_v14 = vld [vmem:[%s5304_s5 + $0x1c0] sm:$0xff]  }
 0x51c   : > { %v1572_v26 = vpack.c.bf16 %v1564_v29, %v1564_v29  ;;  %v1573_v24 = vpack.c.bf16 %v1565_v51, %v1565_v51  ;;  %v1574_v52 = vpack.c.bf16 %v1566_v49, %v1566_v49  ;;  %v1599_v22 = vunpack.c.l.b16 %v1567_v60  ;;  %v3821_v5 = vld [vmem:[%s5304_s5 + $0xb8] sm:$0xff]   ;;  %v3823_v49 = vld [vmem:[%s5304_s5 + $0x180] sm:$0xff]  }
 0x51d   : > { %v1600_v39 = vunpack.c.l.b16 %v1568_v16  ;;  %v1601_v44 = vunpack.c.l.b16 %v1569_v28  ;;  %v1602_v37 = vunpack.c.l.b16 %v1570_v3  ;;  %v1603_v38 = vunpack.c.l.b16 %v1571_v42 }
 0x51e   : > { %v1604_v47 = vunpack.c.l.b16 %v1572_v26  ;;  %v1605_v33 = vunpack.c.l.b16 %v1573_v24  ;;  %v1606_v57 = vunpack.c.l.b16 %v1574_v52  ;;  %v1760_v19 = vmul.f32 %v4923_v31, %v4768_v46  ;;  %v3824_v46 = vld [vmem:[%s5304_s5 + $0x1c8] sm:$0xff]   ;;  %v3826_v26 = vld [vmem:[%s5304_s5 + $0x1d0] sm:$0xff]   ;;  %v3828_v52 = vld [vmem:[%s5304_s5 + $0x1d8] sm:$0xff]  }
 0x51f   : > { %v1607_v59 = vrot.slane %v1600_v39, 7  ;;  %v1609_v48 = vrot.slane %v1601_v44, 6  ;;  %v1611_v34 = vrot.slane %v1602_v37, 5  ;;  %v1613_v50 = vrot.slane %v1603_v38, 4  ;;  %v3827_v24 = vld [vmem:[%s5304_s5 + $0x190] sm:$0xff]   ;;  %v3829_v39 = vld [vmem:[%s5304_s5 + $0x198] sm:$0xff]  }
 0x520   : > { %v1615_v0 = vrot.slane %v1604_v47, 3  ;;  %v1617_v2 = vrot.slane %v1605_v33, 2  ;;  %v1619_v4 = vrot.slane %v1606_v57, 1  ;;  %v1765_v10 = vmul.f32 %v4923_v31, %v4794_v23  ;;  %v3825_v23 = vld [vmem:[%s5304_s5 + $0x188] sm:$0xff]   ;;  %v3830_v44 = vld [vmem:[%s5304_s5 + $0x1e0] sm:$0xff]   ;;  %v3834_v47 = vld [vmem:[%s5304_s5 + $0x1f0] sm:$0xff]  }
 0x521   : > { %v1608_v32 = vsel %vm1464_vm1, %v1607_v59, %v1599_v22  ;;  %v1768_v28 = vpack.c.bf16 %v1760_v19, %v1760_v19  ;;  %v3831_v37 = vld [vmem:[%s5304_s5 + $0x1a0] sm:$0xff]   ;;  %v3832_v38 = vld [vmem:[%s5304_s5 + $0x1e8] sm:$0xff]   ;;  %v3835_v59 = vld [vmem:[%s5304_s5 + $0x1b0] sm:$0xff]   ;;  %v1764_v57 = vmul.f32 %v4923_v31, %v4789_v36 }
 0x522   : > { %v1610_v56 = vsel %vm1466_vm2, %v1609_v48, %v1608_v32  ;;  %v1773_v42 = vpack.c.bf16 %v1765_v10, %v1765_v10  ;;  %v3833_v22 = vld [vmem:[%s5304_s5 + $0x1a8] sm:$0xff]   ;;  %v3836_v48 = vld [vmem:[%s5304_s5 + $0x1f8] sm:$0xff]  }
 0x523   : > { %v1612_v20 = vsel %vm1468_vm3, %v1611_v34, %v1610_v56  ;;  %v3476_v6 = vpop.f32.mrb[32].mxu0  ;;  %v3837_v33 = vld [vmem:[%s5304_s5 + $0x1b8] sm:$0xff]   ;;  %v1772_v32 = vpack.c.bf16 %v1764_v57, %v1764_v57  ;;  %v3852_v10 = vld [vmem:[%s5305_s6 + $0x44] ss:$8 sps:$4 sm:$0xff]  }
 0x524   : > { %v1614_v63 = vsel %vm1470_vm4, %v1613_v50, %v1612_v20  ;;  %v3477_v55 = vpop.f32.mrb[33].mxu0  ;;  %v3869_v57 = vld [vmem:[#allocation4 + $0x18] sm:$0xff]  }
 0x525   : > { %v1616_v12 = vsel %vm1472_vm5, %v1615_v0, %v1614_v63  ;;  %v5058_v7 = vadd.f32 %v3477_v55, %v3476_v6  ;;  %v3479_v40 = vpop.f32.mrb[34].mxu0  ;;  %v429_v0 = vld [vmem:[#allocation6 + $0x18] ss:$0 sm:$0xff] }
 0x526   : > { %v1618_v53 = vsel %vm1474_vm6, %v1617_v2, %v1616_v12  ;;  %v3480_v25 = vpop.f32.mrb[35].mxu0 }
 0x527   : > { %v1620_v54 = vsel %vm1476_vm7, %v1619_v4, %v1618_v53  ;;  %v2321_v12 = vadd.f32 %v5058_v7, %v429_v0  ;;  %v3875_v0 = vld [vmem:[#allocation4 + $0x30] sm:$0xff]  }
 0x528   : > { %v1621_v45 = vpack.c.b16 %v1620_v54, %v1620_v54  ;;  %v428_v54 = vld [vmem:[#allocation6 + $0x10] ss:$0 sm:$0xff] }
 0x52a   : > { %3650 = vmatmul.mubr.bf16.vlgmr.msra.gmra.mrb[16].mxu1 %v1621_v45 }
 0x52b   : > { %3483 = vmatpush3.bf16.msra.mxu1 %v3807_v61  ;;  %2358 = vmatprep.mubr.bf16.mxu1 %v1769_v30  ;;  %v436_v30 = vld [vmem:[#allocation6 + $0x3] ss:$0 sm:$0xff] }
 0x52c   : > { %3484 = vmatprep.subr.bf16.mxu1 %v3808_v8  ;;  %v435_v8 = vld [vmem:[#allocation6 + $0x2] ss:$0 sm:$0xff] }
 0x52f   : > { %3485 = vmatpush3.bf16.msra.mxu1 %v3809_v35 }
 0x530   : > { %3486 = vmatprep.subr.bf16.mxu1 %v3810_v15 }
 0x533   : > { %3487 = vmatpush3.bf16.msra.mxu1 %v3811_v27 }
 0x534   : > { %3488 = vmatprep.subr.bf16.mxu1 %v3812_v17  ;;  %v3838_v17 = vld [vmem:[%s5305_s6] ss:$8 sps:$4 sm:$0xff]  }
 0x537   : > { %3489 = vmatpush3.bf16.msra.mxu1 %v3813_v13  ;;  %v3840_v13 = vld [vmem:[%s5305_s6 + $0x4] ss:$8 sps:$4 sm:$0xff]  }
 0x538   : > { %3490 = vmatprep.subr.bf16.mxu1 %v3814_v43  ;;  %v3843_v43 = vld [vmem:[%s5305_s6 + $0x14] ss:$8 sps:$4 sm:$0xff]   ;;  %2568 = vmatprep.subr.bf16.mxu0 %v3840_v13 }
 0x539   : > { %2569 = vmatpush1.bf16.msra.mxu0 %v3838_v17 }
 0x53a   : > { %2570 = vmatprep.subr.bf16.mxu0 %v3843_v43 }
 0x53b   : > { %3491 = vmatpush3.bf16.msra.mxu1 %v3815_v58  ;;  %v3841_v58 = vld [vmem:[%s5305_s6 + $0x10] ss:$8 sps:$4 sm:$0xff]  }
 0x53c   : > { %3492 = vmatprep.subr.bf16.mxu1 %v3816_v1  ;;  %v3846_v1 = vld [vmem:[%s5305_s6 + $0x24] ss:$8 sps:$4 sm:$0xff]  }
 0x53d   : > { %2571 = vmatpush1.bf16.msra.mxu0 %v3841_v58 }
 0x53e   : > { %2572 = vmatprep.subr.bf16.mxu0 %v3846_v1 }
 0x53f   : > { %3493 = vmatpush3.bf16.msra.mxu1 %v3817_v11  ;;  %v3844_v11 = vld [vmem:[%s5305_s6 + $0x20] ss:$8 sps:$4 sm:$0xff]  }
 0x540   : > { %3494 = vmatprep.subr.bf16.mxu1 %v3818_v9  ;;  %v3849_v9 = vld [vmem:[%s5305_s6 + $0x34] ss:$8 sps:$4 sm:$0xff]  }
 0x541   : > { %2573 = vmatpush1.bf16.msra.mxu0 %v3844_v11 }
 0x542   : > { %2574 = vmatprep.subr.bf16.mxu0 %v3849_v9 }
 0x543   : > { %3495 = vmatpush3.bf16.msra.mxu1 %v3819_v41  ;;  %v3520_v29 = vpop.f32.mrb[36].mxu0  ;;  %v3847_v41 = vld [vmem:[%s5305_s6 + $0x30] ss:$8 sps:$4 sm:$0xff]  }
 0x544   : > { %3496 = vmatprep.subr.bf16.mxu1 %v3820_v21  ;;  %v3521_v51 = vpop.f32.mrb[37].mxu0 }
 0x545   : > { %v3522_v60 = vadd.f32 %v3521_v51, %v3520_v29  ;;  %v3523_v16 = vpop.f32.mrb[38].mxu0  ;;  %2575 = vmatpush1.bf16.msra.mxu0 %v3847_v41  ;;  %v3850_v29 = vld [vmem:[%s5305_s6 + $0x40] ss:$8 sps:$4 sm:$0xff]   ;;  %v3855_v51 = vld [vmem:[%s5305_s6 + $0x54] ss:$8 sps:$4 sm:$0xff]  }
 0x546   : > { %v3524_v3 = vpop.f32.mrb[39].mxu0  ;;  %2576 = vmatprep.subr.bf16.mxu0 %v3852_v10  ;;  %v4168_v16 = vmov 0  }
 0x547   : > { %3497 = vmatpush3.bf16.msra.mxu1 %v3821_v5  ;;  %2600 = vmatprep.mubr.bf16.mxu0 %v4168_v16  ;;  %v3859_v3 = vld [vmem:[%s5305_s6 + $0x70] ss:$8 sps:$4 sm:$0xff]  }
 0x548   : > { %3526 = vmatprep.subr.bf16.mxu1 %v3822_v14 }
 0x549   : > { %2577 = vmatpush1.bf16.msra.mxu0 %v3850_v29 }
 0x54a   : > { %2359 = vmatmul.mubr.bf16.vlgmr.msra.gmra.mrb[20].mxu1 %v1768_v28  ;;  %2578 = vmatprep.subr.bf16.mxu0 %v3855_v51  ;;  %v3856_v28 = vld [vmem:[%s5305_s6 + $0x60] ss:$8 sps:$4 sm:$0xff]  }
 0x54b   : > { %3527 = vmatpush3.bf16.msra.mxu1 %v3823_v49  ;;  %2438 = vmatprep.mubr.bf16.mxu1 %v1773_v42  ;;  %v3853_v49 = vld [vmem:[%s5305_s6 + $0x50] ss:$8 sps:$4 sm:$0xff]  }
 0x54c   : > { %3528 = vmatprep.subr.bf16.mxu1 %v3824_v46  ;;  %v3861_v46 = vld [vmem:[%s5305_s6 + $0x74] ss:$8 sps:$4 sm:$0xff]  }
 0x54d   : > { %2579 = vmatpush1.bf16.msra.mxu0 %v3853_v49 }
 0x54f   : > { %3529 = vmatpush3.bf16.msra.mxu1 %v3825_v23 }
 0x550   : > { %3530 = vmatprep.subr.bf16.mxu1 %v3826_v26 }
 0x553   : > { %3531 = vmatpush3.bf16.msra.mxu1 %v3827_v24 }
 0x554   : > { %3532 = vmatprep.subr.bf16.mxu1 %v3828_v52 }
 0x557   : > { %3533 = vmatpush3.bf16.msra.mxu1 %v3829_v39 }
 0x558   : > { %3534 = vmatprep.subr.bf16.mxu1 %v3830_v44 }
 0x55b   : > { %3535 = vmatpush3.bf16.msra.mxu1 %v3831_v37  ;;  %v3862_v37 = vld [vmem:[#allocation4 + $0x40] sm:$0xff]  }
 0x55c   : > { %3536 = vmatprep.subr.bf16.mxu1 %v3832_v38  ;;  %v3863_v38 = vld [vmem:[#allocation4] sm:$0xff]  }
 0x55f   : > { %3537 = vmatpush3.bf16.msra.mxu1 %v3833_v22  ;;  %v3864_v22 = vld [vmem:[#allocation4 + $0x48] sm:$0xff]  }
 0x560   : > { %3538 = vmatprep.subr.bf16.mxu1 %v3834_v47  ;;  %v3865_v47 = vld [vmem:[#allocation4 + $0x8] sm:$0xff]  }
 0x563   : > { %3539 = vmatpush3.bf16.msra.mxu1 %v3835_v59  ;;  %v3866_v59 = vld [vmem:[#allocation4 + $0x50] sm:$0xff]  }
 0x564   : > { %3540 = vmatprep.subr.bf16.mxu1 %v3836_v48  ;;  %v3867_v48 = vld [vmem:[#allocation4 + $0x10] sm:$0xff]  }
 0x567   : > { %3541 = vmatpush3.bf16.msra.mxu1 %v3837_v33  ;;  %v3868_v33 = vld [vmem:[#allocation4 + $0x58] sm:$0xff]  }
 0x568   : > { %3548 = vmatprep.subr.bf16.mxu1 %v3862_v37  ;;  %v3900_v37 = vld [vmem:[%s5307_s8 + $0x78] sm:$0xff]  }
 0x56a   : > { %2439 = vmatmul.mubr.bf16.vlgmr.msra.gmra.mrb[24].mxu1 %v1772_v32  ;;  %v3870_v32 = vld [vmem:[#allocation4 + $0x60] sm:$0xff]  }
 0x56b   : > { %3549 = vmatpush3.bf16.msra.mxu1 %v3863_v38  ;;  %v432_v38 = vld [vmem:[#allocation6 + $0x30] ss:$0 sm:$0xff] }
 0x56c   : > { %3550 = vmatprep.subr.bf16.mxu1 %v3864_v22 }
 0x56f   : > { %3551 = vmatpush3.bf16.msra.mxu1 %v3865_v47 }
 0x570   : > { %3552 = vmatprep.subr.bf16.mxu1 %v3866_v59 }
 0x573   : > { %3553 = vmatpush3.bf16.msra.mxu1 %v3867_v48 }
 0x574   : > { %3554 = vmatprep.subr.bf16.mxu1 %v3868_v33 }
 0x577   : > { %3555 = vmatpush3.bf16.msra.mxu1 %v3869_v57 }
 0x578   : > { %3556 = vmatprep.subr.bf16.mxu1 %v3870_v32 }
 0x5fd   : > { %v1705_v34 = vpop.f32.mrb[16].mxu1 }
 0x5fe   : > { %v3651_v56 = vpop.f32.mrb[17].mxu1  ;;  %v1706_v31 = vadd.f32 %v1705_v34, %v428_v54  ;;  %v3871_v34 = vld [vmem:[#allocation4 + $0x20] sm:$0xff]   ;;  %v3892_v54 = vld [vmem:[%s5307_s8 + $0x58] sm:$0xff]  }
 0x5ff   : > { %v1708_v50 = vpop.f32.mrb[18].mxu1  ;;  %3557 = vmatpush3.bf16.msra.mxu1 %v3871_v34  ;;  %v3872_v56 = vld [vmem:[#allocation4 + $0x68] sm:$0xff]  }
 0x600   : > { %v3652_v20 = vpop.f32.mrb[19].mxu1  ;;  %v2446_v15 = vmul.f32 %v1706_v31, %v435_v8  ;;  %v2792_v44 = vpack.c.bf16 %v1706_v31, %v1706_v31  ;;  %v3873_v50 = vld [vmem:[#allocation4 + $0x28] sm:$0xff]   ;;  %3558 = vmatprep.subr.bf16.mxu1 %v3872_v56  ;;  %v3895_v31 = vld [vmem:[%s5307_s8 + $0x20] sm:$0xff]   ;;  %v2478_v8 = vlaneseq }
 0x601   : > { %v3874_v20 = vld [vmem:[#allocation4 + $0x70] sm:$0xff]  }
 0x603   : > { %3559 = vmatpush3.bf16.msra.mxu1 %v3873_v50 }
 0x604   : > { %3560 = vmatprep.subr.bf16.mxu1 %v3874_v20 }
 0x607   : > { %3561 = vmatpush3.bf16.msra.mxu1 %v3875_v0  ;;  %v433_v0 = vld [vmem:[#allocation6 + $0x38] ss:$0 sm:$0xff] }
 0x61d   : > { %v3498_v63 = vpop.f32.mrb[20].mxu1 }
 0x61e   : > { %v3499_v2 = vpop.f32.mrb[21].mxu1 }
 0x61f   : > { %v3500_v4 = vadd.f32 %v3499_v2, %v3498_v63  ;;  %v3501_v62 = vpop.f32.mrb[22].mxu1  ;;  %v3876_v63 = vld [vmem:[#allocation4 + $0x78] sm:$0xff]  }
 0x620   : > { %v3502_v6 = vpop.f32.mrb[23].mxu1  ;;  %v3877_v2 = vld [vmem:[#allocation4 + $0x38] sm:$0xff]   ;;  %3562 = vmatprep.subr.bf16.mxu1 %v3876_v63  ;;  %v3888_v62 = vld [vmem:[%s5307_s8 + $0x48] sm:$0xff]  }
 0x621   : > { %v2361_v53 = vadd.f32 %v3500_v4, %v2321_v12  ;;  %3563 = vmatpush3.bf16.msra.mxu1 %v3877_v2  ;;  %v3886_v12 = vld [vmem:[%s5307_s8 + $0x40] sm:$0xff]   ;;  %v3889_v6 = vld [vmem:[%s5307_s8 + $0x8] sm:$0xff]  }
 0x622   : > { %3653 = vmatprep.subr.bf16.mxu1 %v4166_v18  ;;  %v3887_v4 = vld [vmem:[%s5307_s8] sm:$0xff]  }
 0x623   : > { %v2401_v55 = vadd.f32 %v3522_v60, %v2361_v53  ;;  %v3858_v60 = vld [vmem:[%s5305_s6 + $0x64] ss:$8 sps:$4 sm:$0xff]   ;;  %v3890_v53 = vld [vmem:[%s5307_s8 + $0x50] sm:$0xff]  }
 0x624   : > { %2580 = vmatprep.subr.bf16.mxu0 %v3858_v60  ;;  %v3878_v60 = vld [vmem:[%s5307_s8 + $0x80] sm:$0xff]  }
 0x625   : > { %2581 = vmatpush1.bf16.msra.mxu0 %v3856_v28  ;;  %v3879_v28 = vld [vmem:[%s5307_s8 + $0x88] sm:$0xff]  }
 0x626   : > { %2582 = vmatprep.subr.bf16.mxu0 %v3861_v46  ;;  %v3880_v46 = vld [vmem:[%s5307_s8 + $0x90] sm:$0xff]  }
 0x629   : > { %2583 = vmatpush1.bf16.msra.mxu0 %v3859_v3  ;;  %v3881_v3 = vld [vmem:[%s5307_s8 + $0x98] sm:$0xff]  }
 0x62a   : > { %3570 = vmatprep.subr.bf16.mxu0 %v3886_v12 }
 0x63d   : > { %v3542_v61 = vpop.f32.mrb[24].mxu1 }
 0x63e   : > { %v3543_v36 = vpop.f32.mrb[25].mxu1 }
 0x63f   : > { %v3544_v40 = vadd.f32 %v3543_v36, %v3542_v61  ;;  %v3545_v45 = vpop.f32.mrb[26].mxu1  ;;  %v3893_v61 = vld [vmem:[%s5307_s8 + $0x18] sm:$0xff]   ;;  %v3894_v36 = vld [vmem:[%s5307_s8 + $0x60] sm:$0xff]  }
 0x640   : > { %v3546_v25 = vpop.f32.mrb[27].mxu1  ;;  %v3897_v45 = vld [vmem:[%s5307_s8 + $0x28] sm:$0xff]  }
 0x641   : > { %v5157_v35 = vadd.f32 %v3544_v40, %v2401_v55  ;;  %v3891_v55 = vld [vmem:[%s5307_s8 + $0x10] sm:$0xff]   ;;  %v3896_v40 = vld [vmem:[%s5307_s8 + $0x68] sm:$0xff]   ;;  %v2479_v25 = vshrl.u32 %v2478_v8, 7 }
 0x643   : > { %v2447_v27 = vmul.f32 %v5157_v35, %v436_v30  ;;  %v2480_v30 = vsub.s32 0, %v2479_v25 }
 0x645   : > { %v2448_v7 = vadd.f32 %v2447_v27, %v2446_v15  ;;  %v431_v15 = vld [vmem:[#allocation6 + $0x20] ss:$8 sm:$0x3]  ;;  %v2484_v27 = vsub.s32 1, %v2479_v25 }
 0x647   : > { %2449 = vadd.xlane.f32.xlu1 %v2448_v7  ;;  %v2485_v17 = vrot.slane %v431_v15, %v2484_v27 }
 0x6d4   : > { %v2450_v21 = vpop.xlane.xlu1 %2449 }
 0x6d5   : > { %v2451_v5 = vmul.f32 0.0078125, %v2450_v21 }
 0x6d7   : > { %v2452_v19 = vsub.f32 %v2448_v7, %v2451_v5  ;;  %v2481_v7 = vrot.slane %v431_v15, %v2480_v30 }
 0x6d9   : > { %v2453_v14 = vmul.f32 %v2452_v19, %v2452_v19 }
 0x6db   : > { %2454 = vadd.xlane.f32.xlu0 %v2453_v14 }
 0x768   : > { %v2455_v42 = vpop.xlane.xlu0 %2454 }
 0x769   : > { %v2456_v23 = vmul.f32 0.0078125, %v2455_v42  ;;  %v3882_v42 = vld [vmem:[%s5307_s8 + $0xa0] sm:$0xff]  }
 0x76b   : > { %v2457_v26 = vadd.f32 1e-05, %v2456_v23  ;;  %v3883_v23 = vld [vmem:[%s5307_s8 + $0xa8] sm:$0xff]  }
 0x76d   : > { %4050 = vrsqrt.f32 %v2457_v26  ;;  %v3884_v26 = vld [vmem:[%s5307_s8 + $0xb0] sm:$0xff]  }
 0x777   : > { %v4051_v24 = vpop.eup %4050 }
 0x778   : > { %v2459_v52 = vmul.f32 %v4051_v24, %v2452_v19  ;;  %v3885_v24 = vld [vmem:[%s5307_s8 + $0xb8] sm:$0xff]  }
 0x77a   : > { %v2460_v39 = vpack.c.bf16 %v2459_v52, %v2459_v52  ;;  %v2793_v52 = vpack.c.bf16 %v5157_v35, %v5157_v35 }
 0x77c   : > { %2601 = vmatmul.mubr.bf16.vlgmr.msra.gmra.mrb[40].mxu0 %v2460_v39  ;;  %v3898_v39 = vld [vmem:[%s5307_s8 + $0x70] sm:$0xff]  }
 0x77d   : > { %3018 = vmatprep.mubr.bf16.mxu0 %v2792_v44  ;;  %3571 = vmatpush3.bf16.msra.mxu0 %v3887_v4  ;;  %v3899_v44 = vld [vmem:[%s5307_s8 + $0x30] sm:$0xff]  }
 0x77e   : > { %3572 = vmatprep.subr.bf16.mxu0 %v3888_v62 }
 0x781   : > { %3573 = vmatpush3.bf16.msra.mxu0 %v3889_v6 }
 0x782   : > { %3574 = vmatprep.subr.bf16.mxu0 %v3890_v53 }
 0x785   : > { %3575 = vmatpush3.bf16.msra.mxu0 %v3891_v55 }
 0x786   : > { %3576 = vmatprep.subr.bf16.mxu0 %v3892_v54 }
 0x789   : > { %3577 = vmatpush3.bf16.msra.mxu0 %v3893_v61 }
 0x78a   : > { %3578 = vmatprep.subr.bf16.mxu0 %v3894_v36 }
 0x78d   : > { %3579 = vmatpush3.bf16.msra.mxu0 %v3895_v31 }
 0x78e   : > { %3580 = vmatprep.subr.bf16.mxu0 %v3896_v40 }
 0x791   : > { %3581 = vmatpush3.bf16.msra.mxu0 %v3897_v45 }
 0x792   : > { %3582 = vmatprep.subr.bf16.mxu0 %v3898_v39 }
 0x795   : > { %3583 = vmatpush3.bf16.msra.mxu0 %v3899_v44 }
 0x796   : > { %3584 = vmatprep.subr.bf16.mxu0 %v3900_v37 }
 0x84f   : > { %v2602_v13 = vpop.f32.mrb[40].mxu0 }
 0x850   : > { %v2603_v43 = vadd.f32 %v2602_v13, %v2481_v7  ;;  %v2604_v58 = vpop.f32.mrb[41].mxu0 }
 0x851   : > { %v2605_v1 = vadd.f32 %v2604_v58, %v2485_v17  ;;  %v2606_v11 = vpop.f32.mrb[42].mxu0 }
 0x852   : > { %v3325_v9 = vmul.f32 -1.442695, %v2603_v43  ;;  %v2607_v41 = vpop.f32.mrb[43].mxu0 }
 0x853   : > { %v3326_v21 = vmul.f32 -1.442695, %v2605_v1 }
 0x854   : > { %4052 = vpow2.f32 %v3325_v9 }
 0x855   : > { %4054 = vpow2.f32 %v3326_v21 }
 0x85e   : > { %v4053_v5 = vpop.eup %4052 }
 0x85f   : > { %v4055_v19 = vpop.eup %4054  ;;  %v2615_v14 = vadd.f32 1.0, %v4053_v5 }
 0x860   : > { %v2616_v10 = vadd.f32 1.0, %v4055_v19 }
 0x861   : > { %4056 = vrcp.f32 %v2615_v14 }
 0x862   : > { %4058 = vrcp.f32 %v2616_v10 }
 0x86b   : > { %v4057_v29 = vpop.eup %4056 }
 0x86c   : > { %v4059_v51 = vpop.eup %4058  ;;  %v2621_v16 = vpack.c.bf16 %v4057_v29, %v4057_v29 }
 0x86d   : > { %v2622_v49 = vpack.c.bf16 %v4059_v51, %v4059_v51 }
 0x86f   : > { %2783 = vmatprep.mubr.bf16.mxu1 %v2622_v49 }
 0x870   : > { %2784 = vmatmul.mubr.bf16.vlgmr.msra.gmra.mrb[28].mxu1 %v2621_v16 }
 0x871   : > { %3654 = vmatpush3.bf16.msra.mxu1 %v3878_v60  ;;  %3669 = vmatprep.mubr.msk.bf16.mxu1 %vm4167_vm8, %v4166_v18 }
 0x872   : > { %3655 = vmatprep.subr.bf16.mxu1 %v4166_v18 }
 0x875   : > { %3656 = vmatpush3.bf16.msra.mxu1 %v3879_v28 }
 0x876   : > { %3657 = vmatprep.subr.bf16.mxu1 %v4166_v18 }
 0x879   : > { %3658 = vmatpush3.bf16.msra.mxu1 %v3880_v46 }
 0x87a   : > { %3659 = vmatprep.subr.bf16.mxu1 %v4166_v18 }
 0x87d   : > { %3660 = vmatpush3.bf16.msra.mxu1 %v3881_v3 }
 0x87e   : > { %3661 = vmatprep.subr.bf16.mxu1 %v4166_v18 }
 0x881   : > { %3662 = vmatpush3.bf16.msra.mxu1 %v3882_v42 }
 0x882   : > { %3663 = vmatprep.subr.bf16.mxu1 %v4166_v18 }
 0x885   : > { %3664 = vmatpush3.bf16.msra.mxu1 %v3883_v23 }
 0x886   : > { %3665 = vmatprep.subr.bf16.mxu1 %v4166_v18 }
 0x889   : > { %3666 = vmatpush3.bf16.msra.mxu1 %v3884_v26 }
 0x88a   : > { %3667 = vmatprep.subr.bf16.mxu1 %v4166_v18  ;;  %v3901_v18 = vld [vmem:[%s5307_s8 + $0x38] sm:$0xff]  }
 0x88b   : > { %3585 = vmatpush3.bf16.msra.mxu0 %v3901_v18 }
 0x88d   : > { %3668 = vmatpush3.bf16.msra.mxu1 %v3885_v24 }
 0x890   : > { %3670 = vmatmul.mubr.bf16.vlgmr.msra.gmra.mrb[32].mxu1 %v2793_v52 }
 0x943   : > { %v3564_v35 = vpop.f32.mrb[28].mxu1 }
 0x944   : > { %v3565_v22 = vpop.f32.mrb[29].mxu1 }
 0x945   : > { %v3566_v47 = vadd.f32 %v3565_v22, %v3564_v35  ;;  %v3567_v59 = vpop.f32.mrb[30].mxu1 }
 0x946   : > { %v3568_v48 = vpop.f32.mrb[31].mxu1 }
 0x947   : > { %v2786_v33 = vadd.f32 %v3566_v47, %v432_v38 }
 0x949   : > { %v2791_v57 = vpack.c.bf16 %v2786_v33, %v2786_v33 }
 0x94b   : > { %3019 = vmatmul.mubr.bf16.vlgmr.msra.gmra.mrb[44].mxu0 %v2791_v57 }
 0x963   : > { %v3060_v32 = vpop.f32.mrb[32].mxu1 }
 0x964   : > { %v3671_v34 = vpop.f32.mrb[33].mxu1 }
 0x965   : > { %v3063_v56 = vpop.f32.mrb[34].mxu1 }
 0x966   : > { %v3672_v50 = vpop.f32.mrb[35].mxu1 }
 0xa1e   : > { %v3586_v20 = vpop.f32.mrb[44].mxu0 }
 0xa1f   : > { %v3587_v63 = vpop.f32.mrb[45].mxu0 }
 0xa20   : > { %v3588_v2 = vadd.f32 %v3587_v63, %v3586_v20  ;;  %v3589_v12 = vpop.f32.mrb[46].mxu0 }
 0xa21   : > { %v3590_v4 = vpop.f32.mrb[47].mxu0 }
 0xa22   : > { %v3021_v62 = vadd.f32 %v3588_v2, %v433_v0 }
 0xa24   : > { %v3061_v6 = vadd.f32 %v3060_v32, %v3021_v62 }
 0xa26   : > { %3067 = vst.msk [vmem:[%s424_s16] sm:$0xff] %vm3066_vm9, %v3061_v6 }
 0xa27 PF: > { %s22_s13 = sadd.s32 1, %s4158_s13  }
 0xa28   : > { %p19_p10 = scmp.ge.s32.totalorder %s22_s13, 4  }
 0xa2a   :  { %21 = sbr.rel (!%p19_p10) target bundleno = 2 (0x2), region = 107 }
 0xa31   :  { %3087 = vsyncpa [#allocation3], 1 }
 0xa32   :  { %3089 = vsyncpa [#allocation3 + $0x1], 1 }
 0xa33   :  { %3090 = vsyncpa [#allocation5], 1 }

</bundles_post_ra>
